<compile_context>
chip_gen: v6e
topology: v6e:2x2x1
jax: 0.10.0
libtpu: 0.0.40
codegen_flags: <defaults>
</compile_context>

<pallas_src>
import functools

import jax
import jax.numpy as jnp
from jax import lax
from jax.experimental import pallas as pl
from jax.experimental.pallas import tpu as pltpu


def _round_up(n, m):
    return ((n + m - 1) // m) * m


def _pad_to(a, shape):
    pads = [(0, s - d) for d, s in zip(a.shape, shape)]
    return jnp.pad(a, pads)


def _tpu_budget():
    """Best-effort (VMEM bytes per TensorCore, TensorCores per chip)."""
    vmem_cap = 128 << 20
    try:
        vmem_cap = int(pltpu.get_tpu_info().vmem_capacity_bytes)
    except Exception:
        pass
    kind = ""
    try:
        kind = jax.devices()[0].device_kind.lower()
    except Exception:
        pass
    # v7x signature: 64 MiB VMEM per TC, 2 TCs per chip (megacore-shardable).
    n_tc = 2 if (vmem_cap <= (64 << 20) or "v7" in kind or "7x" in kind) else 1
    return vmem_cap, n_tc


def _invariant_spec(shape, index_map, vmem):
    """Single-buffered BlockSpec for grid-invariant (weight) inputs."""
    try:
        return pl.BlockSpec(shape, index_map, memory_space=vmem,
                            pipeline_mode=pl.Buffered(1))
    except TypeError:  # older jax without pipeline_mode kwarg
        return pl.BlockSpec(shape, index_map, memory_space=vmem)


def rnn_kernel(*refs, num_layers, seq_len, proj_chunk, unroll_time):
    """Multi-layer tanh RNN recurrence + sigmoid(Linear) for one batch tile.

    Ref layout (L > 1):
      proj0_ref (T, BT, Hp)  precomputed x @ W_ih0 + b0 (time-major, padded)
      wihr_ref  (L-1, Hp, Hp) input weights for layers 1..L-1 (transposed)
      whh_ref   (L, Hp, Hp)  hidden-to-hidden weights (transposed)
      b_ref     (L, 1, Hp)   combined b_ih + b_hh per layer (layer 0 unused)
      fcw_ref   (1, Hp)      final linear weight row (transposed, zero-padded)
      fcb_ref   (1, 1)       final linear bias
      out_ref   (BT, 1)      sigmoid output
      seq_ref   (T, BT, Hp)  VMEM scratch: current layer's projections/outputs
    For L == 1 the wihr / seq refs are dropped.
    """
    if num_layers > 1:
        (proj0_ref, wihr_ref, whh_ref, b_ref, fcw_ref, fcb_ref,
         out_ref, seq_ref) = refs
    else:
        proj0_ref, whh_ref, b_ref, fcw_ref, fcb_ref, out_ref = refs
        wihr_ref = None
        seq_ref = None

    T = seq_len
    BT = proj0_ref.shape[1]
    Hp = whh_ref.shape[-1]
    h0 = jnp.zeros((BT, Hp), jnp.float32)

    def run_layer(src_ref, whh, store_seq):
        # Serial recurrence: only h @ W_hh hits the MXU on the critical path.
        # TODO(synk): hold W_hh resident in the MXU (matmul_push_rhs /
        #             matmul_acc_lhs / matmul_pop) to avoid re-staging the
        #             invariant RHS every step; not done here for portability.
        def step(t, h):
            h = jnp.tanh(src_ref[t]
                         + jnp.dot(h.astype(whh.dtype), whh,
                                   preferred_element_type=jnp.float32))
            if store_seq:  # dead store skipped on the last layer
                seq_ref[t] = h
            return h

        if unroll_time:            # small static T: full unroll for LLO visibility
            h = h0
            for t in range(T):
                h = step(t, h)
            return h
        # Larger T: lightly-unrolled loop to bound vreg pressure / code size.
        return lax.fori_loop(0, T, step, h0, unroll=2)

    # ---- layer 0: input projection (incl. bias) arrives precomputed ---------
    h_last = run_layer(proj0_ref, whh_ref[0], store_seq=num_layers > 1)

    # ---- layers 1 .. L-1 -----------------------------------------------------
    for l in range(1, num_layers):
        # Hoisted input projection for all T steps: big MXU matmuls, chunked
        # over time so only (proj_chunk*BT, Hp) intermediates are live,
        # written back in place before the serial recurrence reads them.
        for t0 in range(0, T, proj_chunk):
            c = min(proj_chunk, T - t0)
            flat = seq_ref[pl.ds(t0, c)].reshape(c * BT, Hp)
            proj = jnp.dot(flat.astype(wihr_ref.dtype), wihr_ref[l - 1],
                           preferred_element_type=jnp.float32) + b_ref[l]
            seq_ref[pl.ds(t0, c)] = proj.reshape(c, BT, Hp)

        h_last = run_layer(seq_ref, whh_ref[l], store_seq=l < num_layers - 1)

    # ---- dropout (eval == identity), then sigmoid(Linear(H, 1)) -------------
    # VPU multiply + lane reduction instead of an N=1 MXU matmul.
    logits = jnp.sum(h_last * fcw_ref[...], axis=-1, keepdims=True) + fcb_ref[0, 0]
    out_ref[...] = jax.nn.sigmoid(logits)  # (BT,1) masked store: negligible size


def sms_rnn_forward(x, params, *, use_bf16_weights=False):
    """x: (B, T, Din) float32. Returns (B, 1) float32 (eval-mode forward)."""
    B, T, Din = x.shape
    L, H, _ = params["w_hh"].shape
    f32 = jnp.float32
    # bf16 MXU feed halves weight VMEM and cuts per-step dot latency on the
    # bf16-native MXUs, but deviates from exact f32 PyTorch numerics.
    wdtype = jnp.bfloat16 if use_bf16_weights else f32
    wbytes = 2 if use_bf16_weights else 4

    vmem_cap, n_tc = _tpu_budget()
    budget = max(vmem_cap - (8 << 20), 16 << 20)  # headroom for Mosaic scratch

    # Pad to vreg-friendly shapes: batch -> multiple of 8 (sublane),
    # hidden -> multiple of 128 (lane). Zero padding is numerically exact.
    B8 = _round_up(B, 8)
    Hp = _round_up(H, 128)
    proj_chunk = min(T, 8)
    unroll_time = T <= 16

    def resident_bytes(bt):
        weights = ((L - 1) * Hp * Hp * wbytes       # W_ih layers 1..L-1 (1 buf)
                   + L * Hp * Hp * wbytes           # W_hh (1 buf)
                   + L * Hp * 4 + Hp * 4 + 4)       # biases + fc (f32)
        proj0 = 2 * T * bt * Hp * 4                 # double-buffered input block
        seq = (T * bt * Hp * 4) if L > 1 else 0     # scratch (single copy)
        tmp = (2 * proj_chunk * bt * Hp * 4) if L > 1 else 0  # chunk matmul temps
        return weights + proj0 + seq + tmp + 2 * bt * 4

    # Generation-aware batch tiling:
    #  * dual-TC (v7x): >= 2 "parallel" batch tiles so both cores get work.
    #  * single-TC (v5e/v6e): one maximal tile; extra grid steps would just
    #    replay the serial recurrence, so grow BT until VMEM binds instead.
    if n_tc >= 2 and B8 >= 16:
        BT = _round_up(pl.cdiv(B8, n_tc), 8)
    else:
        BT = B8
    while BT > 8 and resident_bytes(BT) > budget:
        BT = _round_up((BT + 1) // 2, 8)
    Bp = _round_up(B8, BT)
    n_bt = Bp // BT

    w_ih0 = _pad_to(params["w_ih0"].astype(f32), (Din, Hp))
    w_hh = _pad_to(params["w_hh"].astype(f32), (L, Hp, Hp)).astype(wdtype)
    b = _pad_to(params["b"].astype(f32), (L, 1, Hp))
    fc_w = _pad_to(params["fc_w"].astype(f32).T, (1, Hp))       # (1, Hp)
    fc_b = params["fc_b"].astype(f32).reshape(1, 1)             # (1, 1)

    # Layer-0 input projection + bias for ALL time steps, directly in
    # time-major padded layout (one large MXU-efficient matmul in the wrapper;
    # no transpose round-trip or narrow Din lanes inside the kernel).
    x_p = _pad_to(x.astype(f32), (Bp, T, Din))
    proj0 = jnp.einsum("btd,dh->tbh", x_p, w_ih0,
                       preferred_element_type=f32) + b[0]       # (T, Bp, Hp)

    vmem = pltpu.MemorySpace.VMEM

    args = [proj0]
    in_specs = [pl.BlockSpec((T, BT, Hp), lambda i: (0, i, 0), memory_space=vmem)]
    if L > 1:
        w_ihr = _pad_to(params["w_ih_rest"][:L - 1].astype(f32),
                        (L - 1, Hp, Hp)).astype(wdtype)
        args.append(w_ihr)
        in_specs.append(_invariant_spec((L - 1, Hp, Hp), lambda i: (0, 0, 0), vmem))
    args += [w_hh, b, fc_w, fc_b]
    in_specs += [
        _invariant_spec((L, Hp, Hp), lambda i: (0, 0, 0), vmem),
        _invariant_spec((L, 1, Hp), lambda i: (0, 0, 0), vmem),
        _invariant_spec((1, Hp), lambda i: (0, 0), vmem),
        _invariant_spec((1, 1), lambda i: (0, 0), vmem),
    ]
    scratch_shapes = [pltpu.VMEM((T, BT, Hp), f32)] if L > 1 else []

    vmem_limit = int(min(max(resident_bytes(BT) + (4 << 20), 16 << 20), budget))

    out_p = pl.pallas_call(
        functools.partial(rnn_kernel, num_layers=L, seq_len=T,
                          proj_chunk=proj_chunk, unroll_time=unroll_time),
        out_shape=jax.ShapeDtypeStruct((Bp, 1), f32),
        grid=(n_bt,),
        in_specs=in_specs,
        out_specs=pl.BlockSpec((BT, 1), lambda i: (i, 0), memory_space=vmem),
        scratch_shapes=scratch_shapes,
        compiler_params=pltpu.CompilerParams(
            dimension_semantics=("parallel",),
            vmem_limit_bytes=vmem_limit),
    )(*args)

    return out_p[:B]


def init_params(key, input_size, hidden_size, num_layers):
    """Deterministic init mimicking PyTorch's U(-1/sqrt(H), 1/sqrt(H))."""
    H, L = hidden_size, num_layers
    bound = 1.0 / jnp.sqrt(jnp.float32(H))
    keys = jax.random.split(key, 8)

    def u(k, shape):
        return jax.random.uniform(k, shape, jnp.float32, -bound, bound)

    w_ih0 = u(keys[0], (input_size, H))                     # transposed
    n_rest = max(L - 1, 1)
    w_ih_rest = u(keys[1], (n_rest, H, H))
    if L == 1:
        w_ih_rest = jnp.zeros_like(w_ih_rest)               # unused dummy
    w_hh = u(keys[2], (L, H, H))
    b_ih = u(keys[3], (L, 1, H))
    b_hh = u(keys[4], (L, 1, H))
    fc_w = jax.random.uniform(keys[5], (H, 1), jnp.float32, -bound, bound)
    fc_b = jax.random.uniform(keys[6], (1, 1), jnp.float32, -bound, bound)
    return {
        "w_ih0": w_ih0,
        "w_ih_rest": w_ih_rest,
        "w_hh": w_hh,
        "b": b_ih + b_hh,
        "fc_w": fc_w,
        "fc_b": fc_b,
    }


def sms_rnn_reference(x, params):
    """Pure-JAX reference of the same forward (eval-mode dropout)."""
    B, T, Din = x.shape
    L, H, _ = params["w_hh"].shape
    seq = x.astype(jnp.float32)
    for l in range(L):
        wih = params["w_ih0"] if l == 0 else params["w_ih_rest"][l - 1]
        whh = params["w_hh"][l]
        b = params["b"][l]
        h = jnp.zeros((B, H), jnp.float32)
        outs = []
        for t in range(T):
            h = jnp.tanh(seq[:, t, :] @ wih + h @ whh + b)
            outs.append(h)
        seq = jnp.stack(outs, axis=1)
    last = seq[:, -1, :]
    return jax.nn.sigmoid(last @ params["fc_w"] + params["fc_b"][0, 0])


if __name__ == "__main__":
    B, T, Din, H, L = 2, 8, 4, 32, 2
    key = jax.random.PRNGKey(0)
    kx, kp = jax.random.split(key)
    x = jax.random.normal(kx, (B, T, Din), jnp.float32)
    params = init_params(kp, Din, H, L)

    out = sms_rnn_forward(x, params)      # f32 path: exact reference parity
    out = jax.block_until_ready(out)

    ref = sms_rnn_reference(x, params)
    assert out.shape == (B, 1)
    assert jnp.allclose(out, ref, atol=1e-5, rtol=1e-5)
    print("KERNEL_OK")
</pallas_src>

<mosaic_0001>
module attributes {stable_mosaic.version = 11 : i64} {
  func.func @rnn_kernel(%arg0: i32, %arg1: memref<8x8x128xf32, #tpu.memory_space<vmem>>, %arg2: memref<1x128x128xf32, #tpu.memory_space<vmem>>, %arg3: memref<2x128x128xf32, #tpu.memory_space<vmem>>, %arg4: memref<2x1x128xf32, #tpu.memory_space<vmem>>, %arg5: memref<1x128xf32, #tpu.memory_space<vmem>>, %arg6: memref<1x1xf32, #tpu.memory_space<vmem>>, %arg7: memref<8x1xf32, #tpu.memory_space<vmem>>, %arg8: memref<8x8x128xf32, #tpu.memory_space<vmem>>) attributes {dimension_semantics = [#tpu.dimension_semantics<parallel>], iteration_bounds = array<i64: 1>, scalar_prefetch = 0 : i64, scratch_operands = 1 : i64, tpu.core_type = #tpu.core_type<tc>, window_params = [{transform_indices = @transform_0, window_bounds = array<i64: 8, 8, 128>}, {pipeline_mode = #tpu.pipeline_mode<synchronous>, transform_indices = @transform_1, window_bounds = array<i64: 1, 128, 128>}, {pipeline_mode = #tpu.pipeline_mode<synchronous>, transform_indices = @transform_2, window_bounds = array<i64: 2, 128, 128>}, {pipeline_mode = #tpu.pipeline_mode<synchronous>, transform_indices = @transform_3, window_bounds = array<i64: 2, 1, 128>}, {pipeline_mode = #tpu.pipeline_mode<synchronous>, transform_indices = @transform_4, window_bounds = array<i64: 1, 128>}, {pipeline_mode = #tpu.pipeline_mode<synchronous>, transform_indices = @transform_5, window_bounds = array<i64: 1, 1>}, {transform_indices = @transform_6, window_bounds = array<i64: 8, 1>}]} {
    %cst = arith.constant 0.000000e+00 : f32
    %0 = vector.broadcast %cst : f32 to vector<8x128xf32>
    %c0 = arith.constant 0 : index
    %c0_0 = arith.constant 0 : index
    %c0_1 = arith.constant 0 : index
    %1 = vector.load %arg3[%c0, %c0_0, %c0_1] : memref<2x128x128xf32, #tpu.memory_space<vmem>>, vector<1x128x128xf32>
    %2 = vector.shape_cast %1 : vector<1x128x128xf32> to vector<128x128xf32>
    %c0_2 = arith.constant 0 : index
    %c0_3 = arith.constant 0 : index
    %c0_4 = arith.constant 0 : index
    %3 = vector.load %arg1[%c0_2, %c0_3, %c0_4] : memref<8x8x128xf32, #tpu.memory_space<vmem>>, vector<1x8x128xf32>
    %4 = vector.shape_cast %3 : vector<1x8x128xf32> to vector<8x128xf32>
    %cst_5 = arith.constant dense<0.000000e+00> : vector<8x128xf32>
    %5 = tpu.matmul %0, %2, %cst_5 {dimension_numbers = #tpu.dot_dimension_numbers<[1], [0], [0], [1], [0, 0, 1, 1], [], []>} : vector<8x128xf32>, vector<128x128xf32>, vector<8x128xf32> -> vector<8x128xf32>
    %6 = arith.addf %4, %5 : vector<8x128xf32>
    %7 = math.tanh %6 : vector<8x128xf32>
    %c0_6 = arith.constant 0 : index
    %c0_7 = arith.constant 0 : index
    %c0_8 = arith.constant 0 : index
    %8 = vector.load %arg8[%c0_6, %c0_7, %c0_8] : memref<8x8x128xf32, #tpu.memory_space<vmem>>, vector<1x8x128xf32>
    %9 = vector.shape_cast %8 : vector<1x8x128xf32> to vector<8x128xf32>
    %10 = vector.shape_cast %7 : vector<8x128xf32> to vector<1x8x128xf32>
    tpu.vector_store %arg8[%c0_6, %c0_7, %c0_8], %10 {strides = array<i32>} : memref<8x8x128xf32, #tpu.memory_space<vmem>>, vector<1x8x128xf32>,
    %c1 = arith.constant 1 : index
    %c0_9 = arith.constant 0 : index
    %c0_10 = arith.constant 0 : index
    %11 = vector.load %arg1[%c1, %c0_9, %c0_10] : memref<8x8x128xf32, #tpu.memory_space<vmem>>, vector<1x8x128xf32>
    %12 = vector.shape_cast %11 : vector<1x8x128xf32> to vector<8x128xf32>
    %cst_11 = arith.constant dense<0.000000e+00> : vector<8x128xf32>
    %13 = tpu.matmul %7, %2, %cst_11 {dimension_numbers = #tpu.dot_dimension_numbers<[1], [0], [0], [1], [0, 0, 1, 1], [], []>} : vector<8x128xf32>, vector<128x128xf32>, vector<8x128xf32> -> vector<8x128xf32>
    %14 = arith.addf %12, %13 : vector<8x128xf32>
    %15 = math.tanh %14 : vector<8x128xf32>
    %c1_12 = arith.constant 1 : index
    %c0_13 = arith.constant 0 : index
    %c0_14 = arith.constant 0 : index
    %16 = vector.load %arg8[%c1_12, %c0_13, %c0_14] : memref<8x8x128xf32, #tpu.memory_space<vmem>>, vector<1x8x128xf32>
    %17 = vector.shape_cast %16 : vector<1x8x128xf32> to vector<8x128xf32>
    %18 = vector.shape_cast %15 : vector<8x128xf32> to vector<1x8x128xf32>
    tpu.vector_store %arg8[%c1_12, %c0_13, %c0_14], %18 {strides = array<i32>} : memref<8x8x128xf32, #tpu.memory_space<vmem>>, vector<1x8x128xf32>,
    %c2 = arith.constant 2 : index
    %c0_15 = arith.constant 0 : index
    %c0_16 = arith.constant 0 : index
    %19 = vector.load %arg1[%c2, %c0_15, %c0_16] : memref<8x8x128xf32, #tpu.memory_space<vmem>>, vector<1x8x128xf32>
    %20 = vector.shape_cast %19 : vector<1x8x128xf32> to vector<8x128xf32>
    %cst_17 = arith.constant dense<0.000000e+00> : vector<8x128xf32>
    %21 = tpu.matmul %15, %2, %cst_17 {dimension_numbers = #tpu.dot_dimension_numbers<[1], [0], [0], [1], [0, 0, 1, 1], [], []>} : vector<8x128xf32>, vector<128x128xf32>, vector<8x128xf32> -> vector<8x128xf32>
    %22 = arith.addf %20, %21 : vector<8x128xf32>
    %23 = math.tanh %22 : vector<8x128xf32>
    %c2_18 = arith.constant 2 : index
    %c0_19 = arith.constant 0 : index
    %c0_20 = arith.constant 0 : index
    %24 = vector.load %arg8[%c2_18, %c0_19, %c0_20] : memref<8x8x128xf32, #tpu.memory_space<vmem>>, vector<1x8x128xf32>
    %25 = vector.shape_cast %24 : vector<1x8x128xf32> to vector<8x128xf32>
    %26 = vector.shape_cast %23 : vector<8x128xf32> to vector<1x8x128xf32>
    tpu.vector_store %arg8[%c2_18, %c0_19, %c0_20], %26 {strides = array<i32>} : memref<8x8x128xf32, #tpu.memory_space<vmem>>, vector<1x8x128xf32>,
    %c3 = arith.constant 3 : index
    %c0_21 = arith.constant 0 : index
    %c0_22 = arith.constant 0 : index
    %27 = vector.load %arg1[%c3, %c0_21, %c0_22] : memref<8x8x128xf32, #tpu.memory_space<vmem>>, vector<1x8x128xf32>
    %28 = vector.shape_cast %27 : vector<1x8x128xf32> to vector<8x128xf32>
    %cst_23 = arith.constant dense<0.000000e+00> : vector<8x128xf32>
    %29 = tpu.matmul %23, %2, %cst_23 {dimension_numbers = #tpu.dot_dimension_numbers<[1], [0], [0], [1], [0, 0, 1, 1], [], []>} : vector<8x128xf32>, vector<128x128xf32>, vector<8x128xf32> -> vector<8x128xf32>
    %30 = arith.addf %28, %29 : vector<8x128xf32>
    %31 = math.tanh %30 : vector<8x128xf32>
    %c3_24 = arith.constant 3 : index
    %c0_25 = arith.constant 0 : index
    %c0_26 = arith.constant 0 : index
    %32 = vector.load %arg8[%c3_24, %c0_25, %c0_26] : memref<8x8x128xf32, #tpu.memory_space<vmem>>, vector<1x8x128xf32>
    %33 = vector.shape_cast %32 : vector<1x8x128xf32> to vector<8x128xf32>
    %34 = vector.shape_cast %31 : vector<8x128xf32> to vector<1x8x128xf32>
    tpu.vector_store %arg8[%c3_24, %c0_25, %c0_26], %34 {strides = array<i32>} : memref<8x8x128xf32, #tpu.memory_space<vmem>>, vector<1x8x128xf32>,
    %c4 = arith.constant 4 : index
    %c0_27 = arith.constant 0 : index
    %c0_28 = arith.constant 0 : index
    %35 = vector.load %arg1[%c4, %c0_27, %c0_28] : memref<8x8x128xf32, #tpu.memory_space<vmem>>, vector<1x8x128xf32>
    %36 = vector.shape_cast %35 : vector<1x8x128xf32> to vector<8x128xf32>
    %cst_29 = arith.constant dense<0.000000e+00> : vector<8x128xf32>
    %37 = tpu.matmul %31, %2, %cst_29 {dimension_numbers = #tpu.dot_dimension_numbers<[1], [0], [0], [1], [0, 0, 1, 1], [], []>} : vector<8x128xf32>, vector<128x128xf32>, vector<8x128xf32> -> vector<8x128xf32>
    %38 = arith.addf %36, %37 : vector<8x128xf32>
    %39 = math.tanh %38 : vector<8x128xf32>
    %c4_30 = arith.constant 4 : index
    %c0_31 = arith.constant 0 : index
    %c0_32 = arith.constant 0 : index
    %40 = vector.load %arg8[%c4_30, %c0_31, %c0_32] : memref<8x8x128xf32, #tpu.memory_space<vmem>>, vector<1x8x128xf32>
    %41 = vector.shape_cast %40 : vector<1x8x128xf32> to vector<8x128xf32>
    %42 = vector.shape_cast %39 : vector<8x128xf32> to vector<1x8x128xf32>
    tpu.vector_store %arg8[%c4_30, %c0_31, %c0_32], %42 {strides = array<i32>} : memref<8x8x128xf32, #tpu.memory_space<vmem>>, vector<1x8x128xf32>,
    %c5 = arith.constant 5 : index
    %c0_33 = arith.constant 0 : index
    %c0_34 = arith.constant 0 : index
    %43 = vector.load %arg1[%c5, %c0_33, %c0_34] : memref<8x8x128xf32, #tpu.memory_space<vmem>>, vector<1x8x128xf32>
    %44 = vector.shape_cast %43 : vector<1x8x128xf32> to vector<8x128xf32>
    %cst_35 = arith.constant dense<0.000000e+00> : vector<8x128xf32>
    %45 = tpu.matmul %39, %2, %cst_35 {dimension_numbers = #tpu.dot_dimension_numbers<[1], [0], [0], [1], [0, 0, 1, 1], [], []>} : vector<8x128xf32>, vector<128x128xf32>, vector<8x128xf32> -> vector<8x128xf32>
    %46 = arith.addf %44, %45 : vector<8x128xf32>
    %47 = math.tanh %46 : vector<8x128xf32>
    %c5_36 = arith.constant 5 : index
    %c0_37 = arith.constant 0 : index
    %c0_38 = arith.constant 0 : index
    %48 = vector.load %arg8[%c5_36, %c0_37, %c0_38] : memref<8x8x128xf32, #tpu.memory_space<vmem>>, vector<1x8x128xf32>
    %49 = vector.shape_cast %48 : vector<1x8x128xf32> to vector<8x128xf32>
    %50 = vector.shape_cast %47 : vector<8x128xf32> to vector<1x8x128xf32>
    tpu.vector_store %arg8[%c5_36, %c0_37, %c0_38], %50 {strides = array<i32>} : memref<8x8x128xf32, #tpu.memory_space<vmem>>, vector<1x8x128xf32>,
    %c6 = arith.constant 6 : index
    %c0_39 = arith.constant 0 : index
    %c0_40 = arith.constant 0 : index
    %51 = vector.load %arg1[%c6, %c0_39, %c0_40] : memref<8x8x128xf32, #tpu.memory_space<vmem>>, vector<1x8x128xf32>
    %52 = vector.shape_cast %51 : vector<1x8x128xf32> to vector<8x128xf32>
    %cst_41 = arith.constant dense<0.000000e+00> : vector<8x128xf32>
    %53 = tpu.matmul %47, %2, %cst_41 {dimension_numbers = #tpu.dot_dimension_numbers<[1], [0], [0], [1], [0, 0, 1, 1], [], []>} : vector<8x128xf32>, vector<128x128xf32>, vector<8x128xf32> -> vector<8x128xf32>
    %54 = arith.addf %52, %53 : vector<8x128xf32>
    %55 = math.tanh %54 : vector<8x128xf32>
    %c6_42 = arith.constant 6 : index
    %c0_43 = arith.constant 0 : index
    %c0_44 = arith.constant 0 : index
    %56 = vector.load %arg8[%c6_42, %c0_43, %c0_44] : memref<8x8x128xf32, #tpu.memory_space<vmem>>, vector<1x8x128xf32>
    %57 = vector.shape_cast %56 : vector<1x8x128xf32> to vector<8x128xf32>
    %58 = vector.shape_cast %55 : vector<8x128xf32> to vector<1x8x128xf32>
    tpu.vector_store %arg8[%c6_42, %c0_43, %c0_44], %58 {strides = array<i32>} : memref<8x8x128xf32, #tpu.memory_space<vmem>>, vector<1x8x128xf32>,
    %c7 = arith.constant 7 : index
    %c0_45 = arith.constant 0 : index
    %c0_46 = arith.constant 0 : index
    %59 = vector.load %arg1[%c7, %c0_45, %c0_46] : memref<8x8x128xf32, #tpu.memory_space<vmem>>, vector<1x8x128xf32>
    %60 = vector.shape_cast %59 : vector<1x8x128xf32> to vector<8x128xf32>
    %cst_47 = arith.constant dense<0.000000e+00> : vector<8x128xf32>
    %61 = tpu.matmul %55, %2, %cst_47 {dimension_numbers = #tpu.dot_dimension_numbers<[1], [0], [0], [1], [0, 0, 1, 1], [], []>} : vector<8x128xf32>, vector<128x128xf32>, vector<8x128xf32> -> vector<8x128xf32>
    %62 = arith.addf %60, %61 : vector<8x128xf32>
    %63 = math.tanh %62 : vector<8x128xf32>
    %c7_48 = arith.constant 7 : index
    %c0_49 = arith.constant 0 : index
    %c0_50 = arith.constant 0 : index
    %64 = vector.load %arg8[%c7_48, %c0_49, %c0_50] : memref<8x8x128xf32, #tpu.memory_space<vmem>>, vector<1x8x128xf32>
    %65 = vector.shape_cast %64 : vector<1x8x128xf32> to vector<8x128xf32>
    %66 = vector.shape_cast %63 : vector<8x128xf32> to vector<1x8x128xf32>
    tpu.vector_store %arg8[%c7_48, %c0_49, %c0_50], %66 {strides = array<i32>} : memref<8x8x128xf32, #tpu.memory_space<vmem>>, vector<1x8x128xf32>,
    %c0_51 = arith.constant 0 : index
    %c0_52 = arith.constant 0 : index
    %c0_53 = arith.constant 0 : index
    %67 = vector.load %arg8[%c0_51, %c0_52, %c0_53] : memref<8x8x128xf32, #tpu.memory_space<vmem>>, vector<8x8x128xf32>
    %68 = vector.shape_cast %67 : vector<8x8x128xf32> to vector<64x128xf32>
    %c0_54 = arith.constant 0 : index
    %c0_55 = arith.constant 0 : index
    %c0_56 = arith.constant 0 : index
    %69 = vector.load %arg2[%c0_54, %c0_55, %c0_56] : memref<1x128x128xf32, #tpu.memory_space<vmem>>, vector<1x128x128xf32>
    %70 = vector.shape_cast %69 : vector<1x128x128xf32> to vector<128x128xf32>
    %cst_57 = arith.constant dense<0.000000e+00> : vector<64x128xf32>
    %71 = tpu.matmul %68, %70, %cst_57 {dimension_numbers = #tpu.dot_dimension_numbers<[1], [0], [0], [1], [0, 0, 1, 1], [], []>} : vector<64x128xf32>, vector<128x128xf32>, vector<64x128xf32> -> vector<64x128xf32>
    %c1_58 = arith.constant 1 : index
    %c0_59 = arith.constant 0 : index
    %c0_60 = arith.constant 0 : index
    %72 = vector.load %arg4[%c1_58, %c0_59, %c0_60] : memref<2x1x128xf32, #tpu.memory_space<vmem>>, vector<1x1x128xf32>
    %73 = vector.shape_cast %72 : vector<1x1x128xf32> to vector<1x128xf32>
    %74 = vector.broadcast %73 : vector<1x128xf32> to vector<64x128xf32>
    %75 = arith.addf %71, %74 : vector<64x128xf32>
    %76 = vector.shape_cast %75 : vector<64x128xf32> to vector<8x8x128xf32>
    %c0_61 = arith.constant 0 : index
    %c0_62 = arith.constant 0 : index
    %c0_63 = arith.constant 0 : index
    %77 = vector.load %arg8[%c0_61, %c0_62, %c0_63] : memref<8x8x128xf32, #tpu.memory_space<vmem>>, vector<8x8x128xf32>
    tpu.vector_store %arg8[%c0_61, %c0_62, %c0_63], %76 {strides = array<i32>} : memref<8x8x128xf32, #tpu.memory_space<vmem>>, vector<8x8x128xf32>,
    %c1_64 = arith.constant 1 : index
    %c0_65 = arith.constant 0 : index
    %c0_66 = arith.constant 0 : index
    %78 = vector.load %arg3[%c1_64, %c0_65, %c0_66] : memref<2x128x128xf32, #tpu.memory_space<vmem>>, vector<1x128x128xf32>
    %79 = vector.shape_cast %78 : vector<1x128x128xf32> to vector<128x128xf32>
    %c0_67 = arith.constant 0 : index
    %c0_68 = arith.constant 0 : index
    %c0_69 = arith.constant 0 : index
    %80 = vector.load %arg8[%c0_67, %c0_68, %c0_69] : memref<8x8x128xf32, #tpu.memory_space<vmem>>, vector<1x8x128xf32>
    %81 = vector.shape_cast %80 : vector<1x8x128xf32> to vector<8x128xf32>
    %cst_70 = arith.constant dense<0.000000e+00> : vector<8x128xf32>
    %82 = tpu.matmul %0, %79, %cst_70 {dimension_numbers = #tpu.dot_dimension_numbers<[1], [0], [0], [1], [0, 0, 1, 1], [], []>} : vector<8x128xf32>, vector<128x128xf32>, vector<8x128xf32> -> vector<8x128xf32>
    %83 = arith.addf %81, %82 : vector<8x128xf32>
    %84 = math.tanh %83 : vector<8x128xf32>
    %c1_71 = arith.constant 1 : index
    %c0_72 = arith.constant 0 : index
    %c0_73 = arith.constant 0 : index
    %85 = vector.load %arg8[%c1_71, %c0_72, %c0_73] : memref<8x8x128xf32, #tpu.memory_space<vmem>>, vector<1x8x128xf32>
    %86 = vector.shape_cast %85 : vector<1x8x128xf32> to vector<8x128xf32>
    %cst_74 = arith.constant dense<0.000000e+00> : vector<8x128xf32>
    %87 = tpu.matmul %84, %79, %cst_74 {dimension_numbers = #tpu.dot_dimension_numbers<[1], [0], [0], [1], [0, 0, 1, 1], [], []>} : vector<8x128xf32>, vector<128x128xf32>, vector<8x128xf32> -> vector<8x128xf32>
    %88 = arith.addf %86, %87 : vector<8x128xf32>
    %89 = math.tanh %88 : vector<8x128xf32>
    %c2_75 = arith.constant 2 : index
    %c0_76 = arith.constant 0 : index
    %c0_77 = arith.constant 0 : index
    %90 = vector.load %arg8[%c2_75, %c0_76, %c0_77] : memref<8x8x128xf32, #tpu.memory_space<vmem>>, vector<1x8x128xf32>
    %91 = vector.shape_cast %90 : vector<1x8x128xf32> to vector<8x128xf32>
    %cst_78 = arith.constant dense<0.000000e+00> : vector<8x128xf32>
    %92 = tpu.matmul %89, %79, %cst_78 {dimension_numbers = #tpu.dot_dimension_numbers<[1], [0], [0], [1], [0, 0, 1, 1], [], []>} : vector<8x128xf32>, vector<128x128xf32>, vector<8x128xf32> -> vector<8x128xf32>
    %93 = arith.addf %91, %92 : vector<8x128xf32>
    %94 = math.tanh %93 : vector<8x128xf32>
    %c3_79 = arith.constant 3 : index
    %c0_80 = arith.constant 0 : index
    %c0_81 = arith.constant 0 : index
    %95 = vector.load %arg8[%c3_79, %c0_80, %c0_81] : memref<8x8x128xf32, #tpu.memory_space<vmem>>, vector<1x8x128xf32>
    %96 = vector.shape_cast %95 : vector<1x8x128xf32> to vector<8x128xf32>
    %cst_82 = arith.constant dense<0.000000e+00> : vector<8x128xf32>
    %97 = tpu.matmul %94, %79, %cst_82 {dimension_numbers = #tpu.dot_dimension_numbers<[1], [0], [0], [1], [0, 0, 1, 1], [], []>} : vector<8x128xf32>, vector<128x128xf32>, vector<8x128xf32> -> vector<8x128xf32>
    %98 = arith.addf %96, %97 : vector<8x128xf32>
    %99 = math.tanh %98 : vector<8x128xf32>
    %c4_83 = arith.constant 4 : index
    %c0_84 = arith.constant 0 : index
    %c0_85 = arith.constant 0 : index
    %100 = vector.load %arg8[%c4_83, %c0_84, %c0_85] : memref<8x8x128xf32, #tpu.memory_space<vmem>>, vector<1x8x128xf32>
    %101 = vector.shape_cast %100 : vector<1x8x128xf32> to vector<8x128xf32>
    %cst_86 = arith.constant dense<0.000000e+00> : vector<8x128xf32>
    %102 = tpu.matmul %99, %79, %cst_86 {dimension_numbers = #tpu.dot_dimension_numbers<[1], [0], [0], [1], [0, 0, 1, 1], [], []>} : vector<8x128xf32>, vector<128x128xf32>, vector<8x128xf32> -> vector<8x128xf32>
    %103 = arith.addf %101, %102 : vector<8x128xf32>
    %104 = math.tanh %103 : vector<8x128xf32>
    %c5_87 = arith.constant 5 : index
    %c0_88 = arith.constant 0 : index
    %c0_89 = arith.constant 0 : index
    %105 = vector.load %arg8[%c5_87, %c0_88, %c0_89] : memref<8x8x128xf32, #tpu.memory_space<vmem>>, vector<1x8x128xf32>
    %106 = vector.shape_cast %105 : vector<1x8x128xf32> to vector<8x128xf32>
    %cst_90 = arith.constant dense<0.000000e+00> : vector<8x128xf32>
    %107 = tpu.matmul %104, %79, %cst_90 {dimension_numbers = #tpu.dot_dimension_numbers<[1], [0], [0], [1], [0, 0, 1, 1], [], []>} : vector<8x128xf32>, vector<128x128xf32>, vector<8x128xf32> -> vector<8x128xf32>
    %108 = arith.addf %106, %107 : vector<8x128xf32>
    %109 = math.tanh %108 : vector<8x128xf32>
    %c6_91 = arith.constant 6 : index
    %c0_92 = arith.constant 0 : index
    %c0_93 = arith.constant 0 : index
    %110 = vector.load %arg8[%c6_91, %c0_92, %c0_93] : memref<8x8x128xf32, #tpu.memory_space<vmem>>, vector<1x8x128xf32>
    %111 = vector.shape_cast %110 : vector<1x8x128xf32> to vector<8x128xf32>
    %cst_94 = arith.constant dense<0.000000e+00> : vector<8x128xf32>
    %112 = tpu.matmul %109, %79, %cst_94 {dimension_numbers = #tpu.dot_dimension_numbers<[1], [0], [0], [1], [0, 0, 1, 1], [], []>} : vector<8x128xf32>, vector<128x128xf32>, vector<8x128xf32> -> vector<8x128xf32>
    %113 = arith.addf %111, %112 : vector<8x128xf32>
    %114 = math.tanh %113 : vector<8x128xf32>
    %c7_95 = arith.constant 7 : index
    %c0_96 = arith.constant 0 : index
    %c0_97 = arith.constant 0 : index
    %115 = vector.load %arg8[%c7_95, %c0_96, %c0_97] : memref<8x8x128xf32, #tpu.memory_space<vmem>>, vector<1x8x128xf32>
    %116 = vector.shape_cast %115 : vector<1x8x128xf32> to vector<8x128xf32>
    %cst_98 = arith.constant dense<0.000000e+00> : vector<8x128xf32>
    %117 = tpu.matmul %114, %79, %cst_98 {dimension_numbers = #tpu.dot_dimension_numbers<[1], [0], [0], [1], [0, 0, 1, 1], [], []>} : vector<8x128xf32>, vector<128x128xf32>, vector<8x128xf32> -> vector<8x128xf32>
    %118 = arith.addf %116, %117 : vector<8x128xf32>
    %119 = math.tanh %118 : vector<8x128xf32>
    %c0_99 = arith.constant 0 : index
    %c0_100 = arith.constant 0 : index
    %120 = vector.load %arg5[%c0_99, %c0_100] : memref<1x128xf32, #tpu.memory_space<vmem>>, vector<1x128xf32>
    %121 = vector.broadcast %120 : vector<1x128xf32> to vector<8x128xf32>
    %122 = arith.mulf %119, %121 : vector<8x128xf32>
    %cst_101 = arith.constant dense<0.000000e+00> : vector<8xf32>
    %123 = vector.multi_reduction <add>, %122, %cst_101 [1] : vector<8x128xf32> to vector<8xf32>
    %124 = vector.shape_cast %123 : vector<8xf32> to vector<8x1xf32>
    %c0_102 = arith.constant 0 : index
    %c0_103 = arith.constant 0 : index
    %125 = vector.load %arg6[%c0_102, %c0_103] : memref<1x1xf32, #tpu.memory_space<vmem>>, vector<1x1xf32>
    %126 = vector.extract %125[0, 0] : f32 from vector<1x1xf32>
    %127 = vector.broadcast %126 : f32 to vector<8x1xf32>
    %128 = arith.addf %124, %127 : vector<8x1xf32>
    %129 = arith.negf %128 : vector<8x1xf32>
    %130 = math.exp %129 : vector<8x1xf32>
    %cst_104 = arith.constant 1.000000e+00 : f32
    %131 = vector.broadcast %cst_104 : f32 to vector<8x1xf32>
    %132 = arith.addf %131, %130 : vector<8x1xf32>
    %133 = arith.divf %131, %132 : vector<8x1xf32>
    %c0_105 = arith.constant 0 : index
    %c0_106 = arith.constant 0 : index
    %134 = vector.load %arg7[%c0_105, %c0_106] : memref<8x1xf32, #tpu.memory_space<vmem>>, vector<8x1xf32>
    tpu.vector_store %arg7[%c0_105, %c0_106], %133 {strides = array<i32>} : memref<8x1xf32, #tpu.memory_space<vmem>>, vector<8x1xf32>,
    return
  }
  func.func @transform_0(%arg0: i32) -> (i32, i32, i32) {
    %c0_i32 = arith.constant 0 : i32
    %c0_i32_0 = arith.constant 0 : i32
    %c0_i32_1 = arith.constant 0 : i32
    return %c0_i32, %arg0, %c0_i32_0 : i32, i32, i32
  }
  func.func @transform_1(%arg0: i32) -> (i32, i32, i32) {
    %c0_i32 = arith.constant 0 : i32
    %c0_i32_0 = arith.constant 0 : i32
    %c0_i32_1 = arith.constant 0 : i32
    %c0_i32_2 = arith.constant 0 : i32
    return %c0_i32, %c0_i32_0, %c0_i32_1 : i32, i32, i32
  }
  func.func @transform_2(%arg0: i32) -> (i32, i32, i32) {
    %c0_i32 = arith.constant 0 : i32
    %c0_i32_0 = arith.constant 0 : i32
    %c0_i32_1 = arith.constant 0 : i32
    %c0_i32_2 = arith.constant 0 : i32
    return %c0_i32, %c0_i32_0, %c0_i32_1 : i32, i32, i32
  }
  func.func @transform_3(%arg0: i32) -> (i32, i32, i32) {
    %c0_i32 = arith.constant 0 : i32
    %c0_i32_0 = arith.constant 0 : i32
    %c0_i32_1 = arith.constant 0 : i32
    %c0_i32_2 = arith.constant 0 : i32
    return %c0_i32, %c0_i32_0, %c0_i32_1 : i32, i32, i32
  }
  func.func @transform_4(%arg0: i32) -> (i32, i32) {
    %c0_i32 = arith.constant 0 : i32
    %c0_i32_0 = arith.constant 0 : i32
    %c0_i32_1 = arith.constant 0 : i32
    return %c0_i32, %c0_i32_0 : i32, i32
  }
  func.func @transform_5(%arg0: i32) -> (i32, i32) {
    %c0_i32 = arith.constant 0 : i32
    %c0_i32_0 = arith.constant 0 : i32
    %c0_i32_1 = arith.constant 0 : i32
    return %c0_i32, %c0_i32_0 : i32, i32
  }
  func.func @transform_6(%arg0: i32) -> (i32, i32) {
    %c0_i32 = arith.constant 0 : i32
    %c0_i32_0 = arith.constant 0 : i32
    return %arg0, %c0_i32 : i32, i32
  }
}

</mosaic_0001>

<bundles_post_ra>
// kernel: tpu_custom_call.1
= control target key start
LH: loop header
LB: loop body
LE: loop exit
PB: predicated region body
PF: predicated region fallthrough
CT: control target
= control target key end

     0   :  { %s3193_s0 = inlined_call_operand.hbm [shape: f32[8,8,128], index: 0, kind: input, shape index: {}]   ;;  %s3194_s1 = inlined_call_operand.hbm [shape: f32[1,128,128], index: 1, kind: input, shape index: {}]   ;;  %s3195_s2 = inlined_call_operand.hbm [shape: f32[2,128,128], index: 2, kind: input, shape index: {}]   ;;  %s3196_s3 = inlined_call_operand.vmem [shape: f32[2,1,128], index: 3, kind: input, shape index: {}]   ;;  %s3197_s4 = inlined_call_operand.vmem [shape: f32[1,128], index: 4, kind: input, shape index: {}]   ;;  %s3198_s5 = inlined_call_operand.<no memory space> [shape: f32[1,1], index: 5, kind: input, shape index: {}]   ;;  %s3199_s6 = inlined_call_operand.vmem [shape: f32[8,1], index: 6, kind: output, shape index: {}]  }
   0x1   :  { %v11_v0 = vstv %s3198_s5 }
   0x2   :  { %12 = vst [vmem:[#allocation3] sm:$0x1] %v11_v0 }
   0x3   :  { %13 = vsyncpa [#allocation5], 0 }
   0x4   :  { %14 = vsyncpa [#allocation7], 0  ;;  %s2475_s23 = smov [#allocation6]   ;;  %s2476_s25 = smov [#allocation4]  }
   0x5   :  { %s32_s24 = sshll.u32 %s2475_s23, 4  ;;  %s20_s26 = sshll.u32 %s2476_s25, 4  ;;  %s33_s24 = int_to_ptr.vmem [resolvable:$true] %s32_s24  ;;  %s21_s26 = int_to_ptr.vmem [resolvable:$true] %s20_s26 }
   0x6   :  { %s2419_s27 = scalar_lea.vmem %s33_s24, 2048  ;;  %p2424_p1 = scmp.lt.s32.totalorder %s33_s24, %s33_s24 }
   0x7   :  { %p2420_p0 = scmp.ne.s32.totalorder %s33_s24, %s2419_s27  ;;  %p2425_p2 = scmp.lt.s32.totalorder %s2419_s27, %s2419_s27 }
   0x9   :  { %p2426_p3 = por %p2425_p2, %p2424_p1 }
   0xb   :  { %p2427_p4 = pnand %p2426_p3, %p2420_p0 }
   0xd   :  { %2430 = shalt.err (!%p2427_p4)
}
   0xe   :  { %s2477_s28 = smov 128   ;;  %s2478_s29 = smov 8  }
   0xf   :  { %38 = dma.hbm_to_vmem [thread:$0]  %s3194_s1, 2048, %s33_s24, [#allocation7], %s2477_s28, %s2477_s28, %s2478_s29  }
  0x10   :  { %s2439_s7 = scalar_lea.vmem %s21_s26, 1024  ;;  %p2444_p6 = scmp.lt.s32.totalorder %s21_s26, %s21_s26 }
  0x11   :  { %p2440_p5 = scmp.ne.s32.totalorder %s21_s26, %s2439_s7  ;;  %p2445_p7 = scmp.lt.s32.totalorder %s2439_s7, %s2439_s7 }
  0x13   :  { %p2446_p8 = por %p2445_p7, %p2444_p6 }
  0x15   :  { %p2447_p9 = pnand %p2446_p8, %p2440_p5 }
  0x17   :  { %2450 = shalt.err (!%p2447_p9)
}
  0x18   :  { %26 = dma.hbm_to_vmem [thread:$0]  %s3193_s0, 1024, %s21_s26, [#allocation5], %s2477_s28, %s2477_s28, %s2478_s29  }
  0x19   :  { %s2479_s10 = smov [#allocation8]  }
  0x1a   :  { %s44_s11 = sshll.u32 %s2479_s10, 4  ;;  %s45_s11 = int_to_ptr.vmem [resolvable:$true] %s44_s11 }
  0x1b   :  { %s2459_s12 = scalar_lea.vmem %s45_s11, 4096  ;;  %p2464_p11 = scmp.lt.s32.totalorder %s45_s11, %s45_s11 }
  0x1c   :  { %p2460_p10 = scmp.ne.s32.totalorder %s45_s11, %s2459_s12  ;;  %p2465_p12 = scmp.lt.s32.totalorder %s2459_s12, %s2459_s12 }
  0x1e   :  { %p2466_p13 = por %p2465_p12, %p2464_p11 }
  0x20   :  { %p2467_p0 = pnand %p2466_p13, %p2460_p10 }
  0x22   :  { %2470 = shalt.err (!%p2467_p0)
}
  0x23   :  { %50 = dma.hbm_to_vmem [thread:$0]  %s3195_s2, 4096, %s45_s11, [#allocation7], %s2477_s28, %s2477_s28, %s2478_s29  }
  0x24   :  { %2471 = dma.done.wait [#allocation5], 1024  }
  0x25   :  { %2472 = vsyncadd [#allocation5], 4294966272 }
  0x26   :  { %2473 = dma.done.wait [#allocation7], 6144  }
  0x27   :  { %2474 = vsyncadd [#allocation7], 4294961152  ;;  %v2480_v1 = vmov 0.0   ;;  %vm2481_vm0 = vmmov 0   ;;  %v2535_v2 = vld [vmem:[#allocation8 + $0x78] sm:$0xff]  ;;  %v2537_v3 = vld [vmem:[#allocation8 + $0x70] sm:$0xff] }
  0x28   :  { %1762 = vmatprep.subr.mxu0 %v2480_v1  ;;  %1794 = vmatprep.mubr.msk.f32.mxu0 %vm2481_vm0, %v2480_v1  ;;  %v2542_v4 = vld [vmem:[#allocation8 + $0x68] sm:$0xff]  ;;  %v2548_v5 = vld [vmem:[#allocation8 + $0x60] sm:$0xff]  ;;  %v2554_v6 = vld [vmem:[#allocation8 + $0x58] sm:$0xff]  ;;  %vm1454_vm1 = vcmask 7168  }
  0x29   :  { %1797 = vmatprep.subr.mxu1 %v2480_v1  ;;  %1829 = vmatprep.mubr.msk.f32.mxu1 %vm2481_vm0, %v2480_v1  ;;  %v2560_v7 = vld [vmem:[#allocation8 + $0x50] sm:$0xff]  ;;  %v2566_v8 = vld [vmem:[#allocation8 + $0x48] sm:$0xff]  ;;  %v2572_v9 = vld [vmem:[#allocation8 + $0x40] sm:$0xff] }
  0x2a   :  { %1763 = vmatpush3.msra.mxu0 %v2535_v2  ;;  %1798 = vmatpush3.msra.mxu1 %v2535_v2  ;;  %v2578_v10 = vld [vmem:[#allocation8 + $0x38] sm:$0xff]  ;;  %v2584_v11 = vld [vmem:[#allocation8 + $0x30] sm:$0xff]  ;;  %v2590_v12 = vld [vmem:[#allocation8 + $0x28] sm:$0xff] }
  0x2b   :  { %1764 = vmatprep.subr.mxu0 %v2480_v1  ;;  %1799 = vmatprep.subr.mxu1 %v2480_v1  ;;  %v2596_v13 = vld [vmem:[#allocation8 + $0x20] sm:$0xff]  ;;  %v2602_v14 = vld [vmem:[#allocation8 + $0x18] sm:$0xff]  ;;  %v2608_v15 = vld [vmem:[#allocation8 + $0x10] sm:$0xff] }
  0x2c   :  { %1765 = vmatpush3.msra.mxu0 %v2537_v3  ;;  %1800 = vmatpush3.msra.mxu1 %v2537_v3  ;;  %v2614_v16 = vld [vmem:[#allocation8 + $0x8] sm:$0xff]  ;;  %v2620_v17 = vld [vmem:[#allocation8] sm:$0xff]  ;;  %v233_v28 = vld [vmem:[#allocation4 + $0x10] sm:$0xff] }
  0x2d   :  { %1766 = vmatprep.subr.mxu0 %v2480_v1  ;;  %1801 = vmatprep.subr.mxu1 %v2480_v1  ;;  %v82_v18 = vld [vmem:[#allocation4] sm:$0xff]  ;;  %v157_v23 = vld [vmem:[#allocation4 + $0x8] sm:$0xff]  ;;  %v309_v33 = vld [vmem:[#allocation4 + $0x18] sm:$0xff] }
  0x2e   :  { %1767 = vmatpush3.msra.mxu0 %v2542_v4  ;;  %1802 = vmatpush3.msra.mxu1 %v2542_v4  ;;  %v385_v38 = vld [vmem:[#allocation4 + $0x20] sm:$0xff]  ;;  %v711_v43 = vld [vmem:[#allocation6 + $0x78] sm:$0xff]  ;;  %v461_v44 = vld [vmem:[#allocation4 + $0x28] sm:$0xff] }
  0x2f   :  { %1768 = vmatprep.subr.mxu0 %v2480_v1  ;;  %1803 = vmatprep.subr.mxu1 %v2480_v1  ;;  %v710_v49 = vld [vmem:[#allocation6 + $0x70] sm:$0xff]  ;;  %v709_v50 = vld [vmem:[#allocation6 + $0x68] sm:$0xff]  ;;  %v708_v51 = vld [vmem:[#allocation6 + $0x60] sm:$0xff] }
  0x30   :  { %1769 = vmatpush3.msra.mxu0 %v2548_v5  ;;  %1804 = vmatpush3.msra.mxu1 %v2548_v5  ;;  %v707_v52 = vld [vmem:[#allocation6 + $0x58] sm:$0xff]  ;;  %v706_v53 = vld [vmem:[#allocation6 + $0x50] sm:$0xff]  ;;  %v705_v54 = vld [vmem:[#allocation6 + $0x48] sm:$0xff] }
  0x31   :  { %1770 = vmatprep.subr.mxu0 %v2480_v1  ;;  %1805 = vmatprep.subr.mxu1 %v2480_v1  ;;  %v704_v55 = vld [vmem:[#allocation6 + $0x40] sm:$0xff]  ;;  %v703_v56 = vld [vmem:[#allocation6 + $0x38] sm:$0xff]  ;;  %v702_v57 = vld [vmem:[#allocation6 + $0x30] sm:$0xff] }
  0x32   :  { %1771 = vmatpush3.msra.mxu0 %v2554_v6  ;;  %1806 = vmatpush3.msra.mxu1 %v2554_v6  ;;  %v701_v58 = vld [vmem:[#allocation6 + $0x28] sm:$0xff]  ;;  %v700_v59 = vld [vmem:[#allocation6 + $0x20] sm:$0xff]  ;;  %v699_v60 = vld [vmem:[#allocation6 + $0x18] sm:$0xff] }
  0x33   :  { %1772 = vmatprep.subr.mxu0 %v2480_v1  ;;  %1807 = vmatprep.subr.mxu1 %v2480_v1  ;;  %v698_v61 = vld [vmem:[#allocation6 + $0x10] sm:$0xff]  ;;  %v697_v62 = vld [vmem:[#allocation6 + $0x8] sm:$0xff]  ;;  %v696_v63 = vld [vmem:[#allocation6] sm:$0xff] }
  0x34   :  { %1773 = vmatpush3.msra.mxu0 %v2560_v7  ;;  %1808 = vmatpush3.msra.mxu1 %v2560_v7  ;;  %v2856_v0 = vld [vmem:[#allocation8 + $0xf8] sm:$0xff] }
  0x35   :  { %1774 = vmatprep.subr.mxu0 %v2480_v1  ;;  %1809 = vmatprep.subr.mxu1 %v2480_v1 }
  0x36   :  { %1775 = vmatpush3.msra.mxu0 %v2566_v8  ;;  %1810 = vmatpush3.msra.mxu1 %v2566_v8 }
  0x37   :  { %1776 = vmatprep.subr.mxu0 %v2480_v1  ;;  %1811 = vmatprep.subr.mxu1 %v2480_v1 }
  0x38   :  { %1777 = vmatpush3.msra.mxu0 %v2572_v9  ;;  %1812 = vmatpush3.msra.mxu1 %v2572_v9 }
  0x39   :  { %1778 = vmatprep.subr.mxu0 %v2480_v1  ;;  %1813 = vmatprep.subr.mxu1 %v2480_v1 }
  0x3a   :  { %1779 = vmatpush3.msra.mxu0 %v2578_v10  ;;  %1814 = vmatpush3.msra.mxu1 %v2578_v10 }
  0x3b   :  { %1780 = vmatprep.subr.mxu0 %v2480_v1  ;;  %1815 = vmatprep.subr.mxu1 %v2480_v1 }
  0x3c   :  { %1781 = vmatpush3.msra.mxu0 %v2584_v11  ;;  %1816 = vmatpush3.msra.mxu1 %v2584_v11 }
  0x3d   :  { %1782 = vmatprep.subr.mxu0 %v2480_v1  ;;  %1817 = vmatprep.subr.mxu1 %v2480_v1 }
  0x3e   :  { %1783 = vmatpush3.msra.mxu0 %v2590_v12  ;;  %1818 = vmatpush3.msra.mxu1 %v2590_v12 }
  0x3f   :  { %1784 = vmatprep.subr.mxu0 %v2480_v1  ;;  %1819 = vmatprep.subr.mxu1 %v2480_v1 }
  0x40   :  { %1785 = vmatpush3.msra.mxu0 %v2596_v13  ;;  %1820 = vmatpush3.msra.mxu1 %v2596_v13 }
  0x41   :  { %1786 = vmatprep.subr.mxu0 %v2480_v1  ;;  %1821 = vmatprep.subr.mxu1 %v2480_v1 }
  0x42   :  { %1787 = vmatpush3.msra.mxu0 %v2602_v14  ;;  %1822 = vmatpush3.msra.mxu1 %v2602_v14 }
  0x43   :  { %1788 = vmatprep.subr.mxu0 %v2480_v1  ;;  %1823 = vmatprep.subr.mxu1 %v2480_v1 }
  0x44   :  { %1789 = vmatpush3.msra.mxu0 %v2608_v15  ;;  %1824 = vmatpush3.msra.mxu1 %v2608_v15 }
  0x45   :  { %1790 = vmatprep.subr.mxu0 %v2480_v1  ;;  %1825 = vmatprep.subr.mxu1 %v2480_v1 }
  0x46   :  { %1791 = vmatpush3.msra.mxu0 %v2614_v16  ;;  %1826 = vmatpush3.msra.mxu1 %v2614_v16 }
  0x47   :  { %1792 = vmatprep.subr.mxu0 %v2480_v1  ;;  %1827 = vmatprep.subr.mxu1 %v2480_v1 }
  0x48   :  { %1793 = vmatpush3.msra.mxu0 %v2620_v17  ;;  %1828 = vmatpush3.msra.mxu1 %v2620_v17 }
  0x49   :  { %1795 = vmatmul.mubr.f32.vlgmr.msra.gmra.mxu0 %v2480_v1  ;;  %1832 = vmatprep.subr.mxu0 %v2480_v1 }
  0x4a   :  { %1833 = vmatpush3.msra.mxu0 %v2535_v2  ;;  %1864 = vmatprep.mubr.msk.f32.mxu0 %vm2481_vm0, %v2480_v1 }
  0x4b   :  { %1834 = vmatprep.subr.mxu0 %v2480_v1  ;;  %1867 = vmatprep.subr.mxu1 %v2480_v1 }
  0x4c   :  { %1835 = vmatpush3.msra.mxu0 %v2537_v3 }
  0x4d   :  { %1836 = vmatprep.subr.mxu0 %v2480_v1 }
  0x4e   :  { %1837 = vmatpush3.msra.mxu0 %v2542_v4 }
  0x4f   :  { %1838 = vmatprep.subr.mxu0 %v2480_v1 }
  0x50   :  { %1839 = vmatpush3.msra.mxu0 %v2548_v5 }
  0x51   :  { %1840 = vmatprep.subr.mxu0 %v2480_v1 }
  0x52   :  { %1841 = vmatpush3.msra.mxu0 %v2554_v6 }
  0x53   :  { %1842 = vmatprep.subr.mxu0 %v2480_v1 }
  0x54   :  { %1843 = vmatpush3.msra.mxu0 %v2560_v7 }
  0x55   :  { %1844 = vmatprep.subr.mxu0 %v2480_v1 }
  0x56   :  { %1845 = vmatpush3.msra.mxu0 %v2566_v8 }
  0x57   :  { %1846 = vmatprep.subr.mxu0 %v2480_v1 }
  0x58   :  { %1847 = vmatpush3.msra.mxu0 %v2572_v9 }
  0x59   :  { %1848 = vmatprep.subr.mxu0 %v2480_v1 }
  0x5a   :  { %1849 = vmatpush3.msra.mxu0 %v2578_v10 }
  0x5b   :  { %1850 = vmatprep.subr.mxu0 %v2480_v1 }
  0x5c   :  { %1851 = vmatpush3.msra.mxu0 %v2584_v11 }
  0x5d   :  { %1852 = vmatprep.subr.mxu0 %v2480_v1 }
  0x5e   :  { %1853 = vmatpush3.msra.mxu0 %v2590_v12 }
  0x5f   :  { %1854 = vmatprep.subr.mxu0 %v2480_v1 }
  0x60   :  { %1855 = vmatpush3.msra.mxu0 %v2596_v13 }
  0x61   :  { %1856 = vmatprep.subr.mxu0 %v2480_v1 }
  0x62   :  { %1857 = vmatpush3.msra.mxu0 %v2602_v14 }
  0x63   :  { %1858 = vmatprep.subr.mxu0 %v2480_v1 }
  0x64   :  { %1859 = vmatpush3.msra.mxu0 %v2608_v15 }
  0x65   :  { %1860 = vmatprep.subr.mxu0 %v2480_v1 }
  0x66   :  { %1861 = vmatpush3.msra.mxu0 %v2614_v16 }
  0x67   :  { %1862 = vmatprep.subr.mxu0 %v2480_v1 }
  0x68   :  { %1863 = vmatpush3.msra.mxu0 %v2620_v17 }
  0x69   :  { %1902 = vmatprep.subr.mxu0 %v2480_v1 }
 0x109   :  { %v149_v19 = vpop.f32.mrf.mxu0 }
 0x10a   :  { %v153_v20 = vadd.f32 %v149_v19, %v82_v18 }
 0x10b   :  { %v1796_v21 = vpop.f32.mrf.mxu0 }
 0x10c   :  { %2375 = vtanh.f32 %v153_v20 }
 0x119   :  { %v2666_v22 = vpop.eup %2375 }
 0x11a   :  { %1830 = vmatmul.mubr.f32.vlgmr.msra.gmra.mxu1 %v2666_v22 }
 0x11b   :  { %1868 = vmatpush3.msra.mxu1 %v2535_v2  ;;  %1899 = vmatprep.mubr.msk.f32.mxu1 %vm2481_vm0, %v2480_v1 }
 0x11c   :  { %1869 = vmatprep.subr.mxu1 %v2480_v1 }
 0x11d   :  { %1870 = vmatpush3.msra.mxu1 %v2537_v3 }
 0x11e   :  { %1871 = vmatprep.subr.mxu1 %v2480_v1 }
 0x11f   :  { %1872 = vmatpush3.msra.mxu1 %v2542_v4 }
 0x120   :  { %1873 = vmatprep.subr.mxu1 %v2480_v1 }
 0x121   :  { %1874 = vmatpush3.msra.mxu1 %v2548_v5 }
 0x122   :  { %1875 = vmatprep.subr.mxu1 %v2480_v1 }
 0x123   :  { %1876 = vmatpush3.msra.mxu1 %v2554_v6 }
 0x124   :  { %1877 = vmatprep.subr.mxu1 %v2480_v1 }
 0x125   :  { %1878 = vmatpush3.msra.mxu1 %v2560_v7 }
 0x126   :  { %1879 = vmatprep.subr.mxu1 %v2480_v1 }
 0x127   :  { %1880 = vmatpush3.msra.mxu1 %v2566_v8 }
 0x128   :  { %1881 = vmatprep.subr.mxu1 %v2480_v1 }
 0x129   :  { %1882 = vmatpush3.msra.mxu1 %v2572_v9 }
 0x12a   :  { %1883 = vmatprep.subr.mxu1 %v2480_v1 }
 0x12b   :  { %1884 = vmatpush3.msra.mxu1 %v2578_v10 }
 0x12c   :  { %1885 = vmatprep.subr.mxu1 %v2480_v1 }
 0x12d   :  { %1886 = vmatpush3.msra.mxu1 %v2584_v11 }
 0x12e   :  { %1887 = vmatprep.subr.mxu1 %v2480_v1 }
 0x12f   :  { %1888 = vmatpush3.msra.mxu1 %v2590_v12 }
 0x130   :  { %1889 = vmatprep.subr.mxu1 %v2480_v1 }
 0x131   :  { %1890 = vmatpush3.msra.mxu1 %v2596_v13 }
 0x132   :  { %1891 = vmatprep.subr.mxu1 %v2480_v1 }
 0x133   :  { %1892 = vmatpush3.msra.mxu1 %v2602_v14 }
 0x134   :  { %1893 = vmatprep.subr.mxu1 %v2480_v1 }
 0x135   :  { %1894 = vmatpush3.msra.mxu1 %v2608_v15 }
 0x136   :  { %1895 = vmatprep.subr.mxu1 %v2480_v1 }
 0x137   :  { %1896 = vmatpush3.msra.mxu1 %v2614_v16 }
 0x138   :  { %1897 = vmatprep.subr.mxu1 %v2480_v1 }
 0x139   :  { %1898 = vmatpush3.msra.mxu1 %v2620_v17 }
 0x13a   :  { %1937 = vmatprep.subr.mxu1 %v2480_v1 }
 0x1da   :  { %v224_v24 = vpop.f32.mrf.mxu1 }
 0x1db   :  { %v228_v25 = vadd.f32 %v224_v24, %v157_v23 }
 0x1dc   :  { %v1831_v26 = vpop.f32.mrf.mxu1 }
 0x1dd   :  { %2377 = vtanh.f32 %v228_v25 }
 0x1ea   :  { %v2703_v27 = vpop.eup %2377 }
 0x1eb   :  { %1865 = vmatmul.mubr.f32.vlgmr.msra.gmra.mxu0 %v2703_v27 }
 0x1ec   :  { %1903 = vmatpush3.msra.mxu0 %v2535_v2  ;;  %1934 = vmatprep.mubr.msk.f32.mxu0 %vm2481_vm0, %v2480_v1 }
 0x1ed   :  { %1904 = vmatprep.subr.mxu0 %v2480_v1 }
 0x1ee   :  { %1905 = vmatpush3.msra.mxu0 %v2537_v3 }
 0x1ef   :  { %1906 = vmatprep.subr.mxu0 %v2480_v1 }
 0x1f0   :  { %1907 = vmatpush3.msra.mxu0 %v2542_v4 }
 0x1f1   :  { %1908 = vmatprep.subr.mxu0 %v2480_v1 }
 0x1f2   :  { %1909 = vmatpush3.msra.mxu0 %v2548_v5 }
 0x1f3   :  { %1910 = vmatprep.subr.mxu0 %v2480_v1 }
 0x1f4   :  { %1911 = vmatpush3.msra.mxu0 %v2554_v6 }
 0x1f5   :  { %1912 = vmatprep.subr.mxu0 %v2480_v1 }
 0x1f6   :  { %1913 = vmatpush3.msra.mxu0 %v2560_v7 }
 0x1f7   :  { %1914 = vmatprep.subr.mxu0 %v2480_v1 }
 0x1f8   :  { %1915 = vmatpush3.msra.mxu0 %v2566_v8 }
 0x1f9   :  { %1916 = vmatprep.subr.mxu0 %v2480_v1 }
 0x1fa   :  { %1917 = vmatpush3.msra.mxu0 %v2572_v9 }
 0x1fb   :  { %1918 = vmatprep.subr.mxu0 %v2480_v1 }
 0x1fc   :  { %1919 = vmatpush3.msra.mxu0 %v2578_v10 }
 0x1fd   :  { %1920 = vmatprep.subr.mxu0 %v2480_v1 }
 0x1fe   :  { %1921 = vmatpush3.msra.mxu0 %v2584_v11 }
 0x1ff   :  { %1922 = vmatprep.subr.mxu0 %v2480_v1 }
 0x200   :  { %1923 = vmatpush3.msra.mxu0 %v2590_v12 }
 0x201   :  { %1924 = vmatprep.subr.mxu0 %v2480_v1 }
 0x202   :  { %1925 = vmatpush3.msra.mxu0 %v2596_v13 }
 0x203   :  { %1926 = vmatprep.subr.mxu0 %v2480_v1 }
 0x204   :  { %1927 = vmatpush3.msra.mxu0 %v2602_v14 }
 0x205   :  { %1928 = vmatprep.subr.mxu0 %v2480_v1 }
 0x206   :  { %1929 = vmatpush3.msra.mxu0 %v2608_v15 }
 0x207   :  { %1930 = vmatprep.subr.mxu0 %v2480_v1 }
 0x208   :  { %1931 = vmatpush3.msra.mxu0 %v2614_v16 }
 0x209   :  { %1932 = vmatprep.subr.mxu0 %v2480_v1 }
 0x20a   :  { %1933 = vmatpush3.msra.mxu0 %v2620_v17 }
 0x20b   :  { %1972 = vmatprep.subr.mxu0 %v2480_v1 }
 0x2ab   :  { %v300_v29 = vpop.f32.mrf.mxu0 }
 0x2ac   :  { %v304_v30 = vadd.f32 %v300_v29, %v233_v28  ;;  %v2994_v29 = vld [vmem:[%s3196_s3 + $0x1] ss:$0 sm:$0xff] }
 0x2ad   :  { %v1866_v31 = vpop.f32.mrf.mxu0 }
 0x2ae   :  { %2379 = vtanh.f32 %v304_v30 }
 0x2bb   :  { %v2740_v32 = vpop.eup %2379 }
 0x2bc   :  { %1900 = vmatmul.mubr.f32.vlgmr.msra.gmra.mxu1 %v2740_v32 }
 0x2bd   :  { %1938 = vmatpush3.msra.mxu1 %v2535_v2  ;;  %1969 = vmatprep.mubr.msk.f32.mxu1 %vm2481_vm0, %v2480_v1 }
 0x2be   :  { %1939 = vmatprep.subr.mxu1 %v2480_v1 }
 0x2bf   :  { %1940 = vmatpush3.msra.mxu1 %v2537_v3 }
 0x2c0   :  { %1941 = vmatprep.subr.mxu1 %v2480_v1 }
 0x2c1   :  { %1942 = vmatpush3.msra.mxu1 %v2542_v4 }
 0x2c2   :  { %1943 = vmatprep.subr.mxu1 %v2480_v1 }
 0x2c3   :  { %1944 = vmatpush3.msra.mxu1 %v2548_v5 }
 0x2c4   :  { %1945 = vmatprep.subr.mxu1 %v2480_v1 }
 0x2c5   :  { %1946 = vmatpush3.msra.mxu1 %v2554_v6 }
 0x2c6   :  { %1947 = vmatprep.subr.mxu1 %v2480_v1 }
 0x2c7   :  { %1948 = vmatpush3.msra.mxu1 %v2560_v7 }
 0x2c8   :  { %1949 = vmatprep.subr.mxu1 %v2480_v1 }
 0x2c9   :  { %1950 = vmatpush3.msra.mxu1 %v2566_v8 }
 0x2ca   :  { %1951 = vmatprep.subr.mxu1 %v2480_v1 }
 0x2cb   :  { %1952 = vmatpush3.msra.mxu1 %v2572_v9 }
 0x2cc   :  { %1953 = vmatprep.subr.mxu1 %v2480_v1 }
 0x2cd   :  { %1954 = vmatpush3.msra.mxu1 %v2578_v10 }
 0x2ce   :  { %1955 = vmatprep.subr.mxu1 %v2480_v1 }
 0x2cf   :  { %1956 = vmatpush3.msra.mxu1 %v2584_v11 }
 0x2d0   :  { %1957 = vmatprep.subr.mxu1 %v2480_v1 }
 0x2d1   :  { %1958 = vmatpush3.msra.mxu1 %v2590_v12 }
 0x2d2   :  { %1959 = vmatprep.subr.mxu1 %v2480_v1 }
 0x2d3   :  { %1960 = vmatpush3.msra.mxu1 %v2596_v13 }
 0x2d4   :  { %1961 = vmatprep.subr.mxu1 %v2480_v1 }
 0x2d5   :  { %1962 = vmatpush3.msra.mxu1 %v2602_v14 }
 0x2d6   :  { %1963 = vmatprep.subr.mxu1 %v2480_v1 }
 0x2d7   :  { %1964 = vmatpush3.msra.mxu1 %v2608_v15 }
 0x2d8   :  { %1965 = vmatprep.subr.mxu1 %v2480_v1 }
 0x2d9   :  { %1966 = vmatpush3.msra.mxu1 %v2614_v16 }
 0x2da   :  { %1967 = vmatprep.subr.mxu1 %v2480_v1 }
 0x2db   :  { %1968 = vmatpush3.msra.mxu1 %v2620_v17 }
 0x2dc   :  { %2007 = vmatprep.subr.mxu1 %v2480_v1 }
 0x37c   :  { %v376_v34 = vpop.f32.mrf.mxu1 }
 0x37d   :  { %v380_v35 = vadd.f32 %v376_v34, %v309_v33 }
 0x37e   :  { %v1901_v36 = vpop.f32.mrf.mxu1 }
 0x37f   :  { %2381 = vtanh.f32 %v380_v35 }
 0x38c   :  { %v2777_v37 = vpop.eup %2381 }
 0x38d   :  { %1935 = vmatmul.mubr.f32.vlgmr.msra.gmra.mxu0 %v2777_v37 }
 0x38e   :  { %1973 = vmatpush3.msra.mxu0 %v2535_v2  ;;  %2004 = vmatprep.mubr.msk.f32.mxu0 %vm2481_vm0, %v2480_v1 }
 0x38f   :  { %1974 = vmatprep.subr.mxu0 %v2480_v1 }
 0x390   :  { %1975 = vmatpush3.msra.mxu0 %v2537_v3 }
 0x391   :  { %1976 = vmatprep.subr.mxu0 %v2480_v1 }
 0x392   :  { %1977 = vmatpush3.msra.mxu0 %v2542_v4 }
 0x393   :  { %1978 = vmatprep.subr.mxu0 %v2480_v1 }
 0x394   :  { %1979 = vmatpush3.msra.mxu0 %v2548_v5 }
 0x395   :  { %1980 = vmatprep.subr.mxu0 %v2480_v1 }
 0x396   :  { %1981 = vmatpush3.msra.mxu0 %v2554_v6 }
 0x397   :  { %1982 = vmatprep.subr.mxu0 %v2480_v1 }
 0x398   :  { %1983 = vmatpush3.msra.mxu0 %v2560_v7 }
 0x399   :  { %1984 = vmatprep.subr.mxu0 %v2480_v1 }
 0x39a   :  { %1985 = vmatpush3.msra.mxu0 %v2566_v8 }
 0x39b   :  { %1986 = vmatprep.subr.mxu0 %v2480_v1 }
 0x39c   :  { %1987 = vmatpush3.msra.mxu0 %v2572_v9 }
 0x39d   :  { %1988 = vmatprep.subr.mxu0 %v2480_v1 }
 0x39e   :  { %1989 = vmatpush3.msra.mxu0 %v2578_v10 }
 0x39f   :  { %1990 = vmatprep.subr.mxu0 %v2480_v1 }
 0x3a0   :  { %1991 = vmatpush3.msra.mxu0 %v2584_v11 }
 0x3a1   :  { %1992 = vmatprep.subr.mxu0 %v2480_v1 }
 0x3a2   :  { %1993 = vmatpush3.msra.mxu0 %v2590_v12 }
 0x3a3   :  { %1994 = vmatprep.subr.mxu0 %v2480_v1 }
 0x3a4   :  { %1995 = vmatpush3.msra.mxu0 %v2596_v13 }
 0x3a5   :  { %1996 = vmatprep.subr.mxu0 %v2480_v1 }
 0x3a6   :  { %1997 = vmatpush3.msra.mxu0 %v2602_v14 }
 0x3a7   :  { %1998 = vmatprep.subr.mxu0 %v2480_v1 }
 0x3a8   :  { %1999 = vmatpush3.msra.mxu0 %v2608_v15 }
 0x3a9   :  { %2000 = vmatprep.subr.mxu0 %v2480_v1 }
 0x3aa   :  { %2001 = vmatpush3.msra.mxu0 %v2614_v16 }
 0x3ab   :  { %2002 = vmatprep.subr.mxu0 %v2480_v1 }
 0x3ac   :  { %2003 = vmatpush3.msra.mxu0 %v2620_v17 }
 0x3ad   :  { %2042 = vmatprep.subr.mxu0 %v711_v43 }
 0x44d   :  { %v452_v39 = vpop.f32.mrf.mxu0 }
 0x44e   :  { %v456_v40 = vadd.f32 %v452_v39, %v385_v38 }
 0x44f   :  { %v1936_v41 = vpop.f32.mrf.mxu0 }
 0x450   :  { %2383 = vtanh.f32 %v456_v40 }
 0x45d   :  { %v2813_v42 = vpop.eup %2383 }
 0x45e   :  { %1970 = vmatmul.mubr.f32.vlgmr.msra.gmra.mxu1 %v2813_v42 }
 0x45f   :  { %2008 = vmatpush3.msra.mxu1 %v2535_v2  ;;  %2039 = vmatprep.mubr.msk.f32.mxu1 %vm2481_vm0, %v2480_v1  ;;  %v2859_v2 = vld [vmem:[#allocation8 + $0xf0] sm:$0xff] }
 0x460   :  { %2009 = vmatprep.subr.mxu1 %v2480_v1 }
 0x461   :  { %2010 = vmatpush3.msra.mxu1 %v2537_v3  ;;  %v2863_v3 = vld [vmem:[#allocation8 + $0xe8] sm:$0xff] }
 0x462   :  { %2011 = vmatprep.subr.mxu1 %v2480_v1 }
 0x463   :  { %2012 = vmatpush3.msra.mxu1 %v2542_v4  ;;  %v2867_v4 = vld [vmem:[#allocation8 + $0xe0] sm:$0xff] }
 0x464   :  { %2013 = vmatprep.subr.mxu1 %v2480_v1 }
 0x465   :  { %2014 = vmatpush3.msra.mxu1 %v2548_v5  ;;  %v2871_v5 = vld [vmem:[#allocation8 + $0xd8] sm:$0xff] }
 0x466   :  { %2015 = vmatprep.subr.mxu1 %v2480_v1 }
 0x467   :  { %2016 = vmatpush3.msra.mxu1 %v2554_v6  ;;  %v2875_v6 = vld [vmem:[#allocation8 + $0xd0] sm:$0xff] }
 0x468   :  { %2017 = vmatprep.subr.mxu1 %v2480_v1 }
 0x469   :  { %2018 = vmatpush3.msra.mxu1 %v2560_v7  ;;  %v2879_v7 = vld [vmem:[#allocation8 + $0xc8] sm:$0xff] }
 0x46a   :  { %2019 = vmatprep.subr.mxu1 %v2480_v1 }
 0x46b   :  { %2020 = vmatpush3.msra.mxu1 %v2566_v8  ;;  %v2883_v8 = vld [vmem:[#allocation8 + $0xc0] sm:$0xff] }
 0x46c   :  { %2021 = vmatprep.subr.mxu1 %v2480_v1 }
 0x46d   :  { %2022 = vmatpush3.msra.mxu1 %v2572_v9  ;;  %v2887_v9 = vld [vmem:[#allocation8 + $0xb8] sm:$0xff] }
 0x46e   :  { %2023 = vmatprep.subr.mxu1 %v2480_v1 }
 0x46f   :  { %2024 = vmatpush3.msra.mxu1 %v2578_v10  ;;  %v2891_v10 = vld [vmem:[#allocation8 + $0xb0] sm:$0xff] }
 0x470   :  { %2025 = vmatprep.subr.mxu1 %v2480_v1 }
 0x471   :  { %2026 = vmatpush3.msra.mxu1 %v2584_v11  ;;  %v2895_v11 = vld [vmem:[#allocation8 + $0xa8] sm:$0xff] }
 0x472   :  { %2027 = vmatprep.subr.mxu1 %v2480_v1 }
 0x473   :  { %2028 = vmatpush3.msra.mxu1 %v2590_v12  ;;  %v2899_v12 = vld [vmem:[#allocation8 + $0xa0] sm:$0xff] }
 0x474   :  { %2029 = vmatprep.subr.mxu1 %v2480_v1 }
 0x475   :  { %2030 = vmatpush3.msra.mxu1 %v2596_v13  ;;  %v2903_v13 = vld [vmem:[#allocation8 + $0x98] sm:$0xff] }
 0x476   :  { %2031 = vmatprep.subr.mxu1 %v2480_v1 }
 0x477   :  { %2032 = vmatpush3.msra.mxu1 %v2602_v14  ;;  %v2907_v14 = vld [vmem:[#allocation8 + $0x90] sm:$0xff] }
 0x478   :  { %2033 = vmatprep.subr.mxu1 %v2480_v1 }
 0x479   :  { %2034 = vmatpush3.msra.mxu1 %v2608_v15  ;;  %v2911_v15 = vld [vmem:[#allocation8 + $0x88] sm:$0xff] }
 0x47a   :  { %2035 = vmatprep.subr.mxu1 %v2480_v1 }
 0x47b   :  { %2036 = vmatpush3.msra.mxu1 %v2614_v16  ;;  %v2915_v16 = vld [vmem:[#allocation8 + $0x80] sm:$0xff] }
 0x47c   :  { %2037 = vmatprep.subr.mxu1 %v2480_v1 }
 0x47d   :  { %2038 = vmatpush3.msra.mxu1 %v2620_v17  ;;  %v537_v17 = vld [vmem:[#allocation4 + $0x30] sm:$0xff] }
 0x47e   :  { %2086 = vmatprep.subr.mxu1 %v2480_v1 }
 0x51e   :  { %v528_v45 = vpop.f32.mrf.mxu1 }
 0x51f   :  { %v532_v46 = vadd.f32 %v528_v45, %v461_v44 }
 0x520   :  { %v1971_v47 = vpop.f32.mrf.mxu1 }
 0x521   :  { %2385 = vtanh.f32 %v532_v46 }
 0x52e   :  { %v2386_v48 = vpop.eup %2385 }
 0x52f   :  { %2005 = vmatmul.mubr.f32.vlgmr.msra.gmra.mxu0 %v2386_v48 }
 0x530   :  { %2043 = vmatpush3.msra.mxu0 %v711_v43  ;;  %2074 = vmatprep.mubr.f32.mxu0 %v2666_v22  ;;  %v613_v22 = vld [vmem:[#allocation4 + $0x38] sm:$0xff] }
 0x531   :  { %2044 = vmatprep.subr.mxu0 %v710_v49 }
 0x532   :  { %2045 = vmatpush3.msra.mxu0 %v710_v49 }
 0x533   :  { %2046 = vmatprep.subr.mxu0 %v709_v50 }
 0x534   :  { %2047 = vmatpush3.msra.mxu0 %v709_v50 }
 0x535   :  { %2048 = vmatprep.subr.mxu0 %v708_v51 }
 0x536   :  { %2049 = vmatpush3.msra.mxu0 %v708_v51 }
 0x537   :  { %2050 = vmatprep.subr.mxu0 %v707_v52 }
 0x538   :  { %2051 = vmatpush3.msra.mxu0 %v707_v52 }
 0x539   :  { %2052 = vmatprep.subr.mxu0 %v706_v53 }
 0x53a   :  { %2053 = vmatpush3.msra.mxu0 %v706_v53 }
 0x53b   :  { %2054 = vmatprep.subr.mxu0 %v705_v54 }
 0x53c   :  { %2055 = vmatpush3.msra.mxu0 %v705_v54 }
 0x53d   :  { %2056 = vmatprep.subr.mxu0 %v704_v55 }
 0x53e   :  { %2057 = vmatpush3.msra.mxu0 %v704_v55 }
 0x53f   :  { %2058 = vmatprep.subr.mxu0 %v703_v56 }
 0x540   :  { %2059 = vmatpush3.msra.mxu0 %v703_v56 }
 0x541   :  { %2060 = vmatprep.subr.mxu0 %v702_v57 }
 0x542   :  { %2061 = vmatpush3.msra.mxu0 %v702_v57 }
 0x543   :  { %2062 = vmatprep.subr.mxu0 %v701_v58 }
 0x544   :  { %2063 = vmatpush3.msra.mxu0 %v701_v58 }
 0x545   :  { %2064 = vmatprep.subr.mxu0 %v700_v59 }
 0x546   :  { %2065 = vmatpush3.msra.mxu0 %v700_v59 }
 0x547   :  { %2066 = vmatprep.subr.mxu0 %v699_v60 }
 0x548   :  { %2067 = vmatpush3.msra.mxu0 %v699_v60 }
 0x549   :  { %2068 = vmatprep.subr.mxu0 %v698_v61 }
 0x54a   :  { %2069 = vmatpush3.msra.mxu0 %v698_v61 }
 0x54b   :  { %2070 = vmatprep.subr.mxu0 %v697_v62 }
 0x54c   :  { %2071 = vmatpush3.msra.mxu0 %v697_v62 }
 0x54d   :  { %2072 = vmatprep.subr.mxu0 %v696_v63 }
 0x54e   :  { %2073 = vmatpush3.msra.mxu0 %v696_v63 }
 0x54f   :  { %2075 = vmatmul.mubr.f32.vlgmr.msra.gmra.mxu0 %v2703_v27  ;;  %2121 = vmatprep.subr.mxu0 %v2480_v1 }
 0x550   :  { %2077 = vmatprep.mubr.f32.mxu0 %v2740_v32  ;;  %2122 = vmatpush3.msra.mxu0 %v2856_v0 }
 0x551   :  { %2123 = vmatprep.subr.mxu0 %v2480_v1 }
 0x552   :  { %2124 = vmatpush3.msra.mxu0 %v2859_v2 }
 0x553   :  { %2078 = vmatmul.mubr.f32.gmra.mxu0 %v2777_v37  ;;  %2125 = vmatprep.subr.mxu0 %v2480_v1 }
 0x554   :  { %2080 = vmatprep.mubr.f32.mxu0 %v2813_v42  ;;  %2126 = vmatpush3.msra.mxu0 %v2863_v3 }
 0x555   :  { %2127 = vmatprep.subr.mxu0 %v2480_v1 }
 0x556   :  { %2128 = vmatpush3.msra.mxu0 %v2867_v4 }
 0x557   :  { %2081 = vmatmul.mubr.f32.gmra.mxu0 %v2386_v48  ;;  %2129 = vmatprep.subr.mxu0 %v2480_v1 }
 0x558   :  { %2130 = vmatpush3.msra.mxu0 %v2871_v5 }
 0x559   :  { %2131 = vmatprep.subr.mxu0 %v2480_v1 }
 0x55a   :  { %2132 = vmatpush3.msra.mxu0 %v2875_v6 }
 0x55b   :  { %2133 = vmatprep.subr.mxu0 %v2480_v1 }
 0x55c   :  { %2134 = vmatpush3.msra.mxu0 %v2879_v7 }
 0x55d   :  { %2135 = vmatprep.subr.mxu0 %v2480_v1 }
 0x55e   :  { %2136 = vmatpush3.msra.mxu0 %v2883_v8 }
 0x55f   :  { %2137 = vmatprep.subr.mxu0 %v2480_v1 }
 0x560   :  { %2138 = vmatpush3.msra.mxu0 %v2887_v9 }
 0x561   :  { %2139 = vmatprep.subr.mxu0 %v2480_v1 }
 0x562   :  { %2140 = vmatpush3.msra.mxu0 %v2891_v10 }
 0x563   :  { %2141 = vmatprep.subr.mxu0 %v2480_v1 }
 0x564   :  { %2142 = vmatpush3.msra.mxu0 %v2895_v11 }
 0x565   :  { %2143 = vmatprep.subr.mxu0 %v2480_v1 }
 0x566   :  { %2144 = vmatpush3.msra.mxu0 %v2899_v12 }
 0x567   :  { %2145 = vmatprep.subr.mxu0 %v2480_v1 }
 0x568   :  { %2146 = vmatpush3.msra.mxu0 %v2903_v13 }
 0x569   :  { %2147 = vmatprep.subr.mxu0 %v2480_v1 }
 0x56a   :  { %2148 = vmatpush3.msra.mxu0 %v2907_v14 }
 0x56b   :  { %2149 = vmatprep.subr.mxu0 %v2480_v1 }
 0x56c   :  { %2150 = vmatpush3.msra.mxu0 %v2911_v15 }
 0x56d   :  { %2151 = vmatprep.subr.mxu0 %v2480_v1 }
 0x56e   :  { %2152 = vmatpush3.msra.mxu0 %v2915_v16 }
 0x56f   :  { %2191 = vmatprep.subr.mxu0 %v2480_v1 }
 0x5ef   :  { %v604_v18 = vpop.f32.mrf.mxu0 }
 0x5f0   :  { %v608_v19 = vadd.f32 %v604_v18, %v537_v17 }
 0x5f1   :  { %v2006_v20 = vpop.f32.mrf.mxu0 }
 0x5f2   :  { %2387 = vtanh.f32 %v608_v19 }
 0x5ff   :  { %v2388_v21 = vpop.eup %2387 }
 0x600   :  { %2040 = vmatmul.mubr.f32.vlgmr.msra.gmra.mxu1 %v2388_v21  ;;  %2083 = vmatprep.mubr.f32.mxu0 %v2388_v21 }
 0x601   :  { %2087 = vmatpush3.msra.mxu1 %v2856_v0  ;;  %2118 = vmatprep.mubr.msk.f32.mxu1 %vm2481_vm0, %v2480_v1 }
 0x602   :  { %2088 = vmatprep.subr.mxu1 %v2480_v1 }
 0x603   :  { %2089 = vmatpush3.msra.mxu1 %v2859_v2 }
 0x604   :  { %2090 = vmatprep.subr.mxu1 %v2480_v1 }
 0x605   :  { %2091 = vmatpush3.msra.mxu1 %v2863_v3 }
 0x606   :  { %2092 = vmatprep.subr.mxu1 %v2480_v1 }
 0x607   :  { %2093 = vmatpush3.msra.mxu1 %v2867_v4 }
 0x608   :  { %2094 = vmatprep.subr.mxu1 %v2480_v1 }
 0x609   :  { %2095 = vmatpush3.msra.mxu1 %v2871_v5 }
 0x60a   :  { %2096 = vmatprep.subr.mxu1 %v2480_v1 }
 0x60b   :  { %2097 = vmatpush3.msra.mxu1 %v2875_v6 }
 0x60c   :  { %2098 = vmatprep.subr.mxu1 %v2480_v1 }
 0x60d   :  { %2099 = vmatpush3.msra.mxu1 %v2879_v7 }
 0x60e   :  { %2100 = vmatprep.subr.mxu1 %v2480_v1 }
 0x60f   :  { %2101 = vmatpush3.msra.mxu1 %v2883_v8  ;;  %v2076_v27 = vpop.f32.mrf.mxu0 }
 0x610   :  { %2102 = vmatprep.subr.mxu1 %v2480_v1  ;;  %v792_v41 = vadd.f32 %v2076_v27, %v2994_v29 }
 0x611   :  { %2103 = vmatpush3.msra.mxu1 %v2887_v9  ;;  %v786_v28 = vpop.f32.mrf.mxu0 }
 0x612   :  { %2104 = vmatprep.subr.mxu1 %v2480_v1  ;;  %v787_v30 = vadd.f32 %v2994_v29, %v786_v28 }
 0x613   :  { %2105 = vmatpush3.msra.mxu1 %v2891_v10  ;;  %v3031_v35 = vpop.f32.mrf.mxu0 }
 0x614   :  { %2106 = vmatprep.subr.mxu1 %v2480_v1  ;;  %v802_v51 = vadd.f32 %v3031_v35, %v2994_v29 }
 0x615   :  { %2107 = vmatpush3.msra.mxu1 %v2895_v11  ;;  %v796_v36 = vpop.f32.mrf.mxu0 }
 0x616   :  { %2108 = vmatprep.subr.mxu1 %v2480_v1  ;;  %v797_v46 = vadd.f32 %v2994_v29, %v796_v36 }
 0x617   :  { %2109 = vmatpush3.msra.mxu1 %v2899_v12  ;;  %v3033_v37 = vpop.f32.mrf.mxu0 }
 0x618   :  { %2110 = vmatprep.subr.mxu1 %v2480_v1  ;;  %v812_v61 = vadd.f32 %v3033_v37, %v2994_v29 }
 0x619   :  { %2111 = vmatpush3.msra.mxu1 %v2903_v13  ;;  %v3035_v38 = vpop.f32.mrf.mxu0 }
 0x61a   :  { %2112 = vmatprep.subr.mxu1 %v2480_v1  ;;  %v807_v56 = vadd.f32 %v2994_v29, %v3035_v38 }
 0x61b   :  { %2113 = vmatpush3.msra.mxu1 %v2907_v14 }
 0x61c   :  { %2114 = vmatprep.subr.mxu1 %v2480_v1 }
 0x61d   :  { %2115 = vmatpush3.msra.mxu1 %v2911_v15 }
 0x61e   :  { %2116 = vmatprep.subr.mxu1 %v2480_v1 }
 0x61f   :  { %2117 = vmatpush3.msra.mxu1 %v2915_v16 }
 0x620   :  { %2119 = vmatmul.mubr.f32.vlgmr.msra.gmra.mxu1 %v2480_v1  ;;  %2156 = vmatprep.subr.mxu1 %v2480_v1 }
 0x621   :  { %2157 = vmatpush3.msra.mxu1 %v2856_v0  ;;  %2188 = vmatprep.mubr.msk.f32.mxu1 %vm2481_vm0, %v2480_v1 }
 0x622   :  { %2158 = vmatprep.subr.mxu1 %v2480_v1 }
 0x623   :  { %2159 = vmatpush3.msra.mxu1 %v2859_v2 }
 0x624   :  { %2160 = vmatprep.subr.mxu1 %v2480_v1 }
 0x625   :  { %2161 = vmatpush3.msra.mxu1 %v2863_v3 }
 0x626   :  { %2162 = vmatprep.subr.mxu1 %v2480_v1 }
 0x627   :  { %2163 = vmatpush3.msra.mxu1 %v2867_v4 }
 0x628   :  { %2164 = vmatprep.subr.mxu1 %v2480_v1 }
 0x629   :  { %2165 = vmatpush3.msra.mxu1 %v2871_v5 }
 0x62a   :  { %2166 = vmatprep.subr.mxu1 %v2480_v1 }
 0x62b   :  { %2167 = vmatpush3.msra.mxu1 %v2875_v6 }
 0x62c   :  { %2168 = vmatprep.subr.mxu1 %v2480_v1 }
 0x62d   :  { %2169 = vmatpush3.msra.mxu1 %v2879_v7 }
 0x62e   :  { %2170 = vmatprep.subr.mxu1 %v2480_v1 }
 0x62f   :  { %2171 = vmatpush3.msra.mxu1 %v2883_v8 }
 0x630   :  { %2172 = vmatprep.subr.mxu1 %v2480_v1 }
 0x631   :  { %2173 = vmatpush3.msra.mxu1 %v2887_v9 }
 0x632   :  { %2174 = vmatprep.subr.mxu1 %v2480_v1 }
 0x633   :  { %2175 = vmatpush3.msra.mxu1 %v2891_v10 }
 0x634   :  { %2176 = vmatprep.subr.mxu1 %v2480_v1 }
 0x635   :  { %2177 = vmatpush3.msra.mxu1 %v2895_v11 }
 0x636   :  { %2178 = vmatprep.subr.mxu1 %v2480_v1 }
 0x637   :  { %2179 = vmatpush3.msra.mxu1 %v2899_v12 }
 0x638   :  { %2180 = vmatprep.subr.mxu1 %v2480_v1 }
 0x639   :  { %2181 = vmatpush3.msra.mxu1 %v2903_v13 }
 0x63a   :  { %2182 = vmatprep.subr.mxu1 %v2480_v1 }
 0x63b   :  { %2183 = vmatpush3.msra.mxu1 %v2907_v14 }
 0x63c   :  { %2184 = vmatprep.subr.mxu1 %v2480_v1 }
 0x63d   :  { %2185 = vmatpush3.msra.mxu1 %v2911_v15 }
 0x63e   :  { %2186 = vmatprep.subr.mxu1 %v2480_v1 }
 0x63f   :  { %2187 = vmatpush3.msra.mxu1 %v2915_v16 }
 0x640   :  { %2226 = vmatprep.subr.mxu1 %v2480_v1 }
 0x6c0   :  { %v680_v23 = vpop.f32.mrf.mxu1 }
 0x6c1   :  { %v684_v24 = vadd.f32 %v680_v23, %v613_v22 }
 0x6c2   :  { %v2041_v25 = vpop.f32.mrf.mxu1 }
 0x6c3   :  { %2389 = vtanh.f32 %v684_v24 }
 0x6d0   :  { %v2390_v26 = vpop.eup %2389 }
 0x6d1   :  { %2084 = vmatmul.mubr.f32.gmra.mxu0 %v2390_v26 }
 0x6d2   :  { %2153 = vmatprep.mubr.msk.f32.mxu0 %vm2481_vm0, %v2480_v1 }
 0x6e0   :  { %v917_v31 = vpop.f32.mrf.mxu1 }
 0x6e1   :  { %v921_v32 = vadd.f32 %v917_v31, %v787_v30 }
 0x6e2   :  { %v2120_v33 = vpop.f32.mrf.mxu1 }
 0x6e3   :  { %2391 = vtanh.f32 %v921_v32 }
 0x6f0   :  { %v2392_v34 = vpop.eup %2391 }
 0x6f1   :  { %2154 = vmatmul.mubr.f32.vlgmr.msra.gmra.mxu0 %v2392_v34 }
 0x6f2   :  { %2192 = vmatpush3.msra.mxu0 %v2856_v0  ;;  %2223 = vmatprep.mubr.msk.f32.mxu0 %vm2481_vm0, %v2480_v1 }
 0x6f3   :  { %2193 = vmatprep.subr.mxu0 %v2480_v1 }
 0x6f4   :  { %2194 = vmatpush3.msra.mxu0 %v2859_v2 }
 0x6f5   :  { %2195 = vmatprep.subr.mxu0 %v2480_v1 }
 0x6f6   :  { %2196 = vmatpush3.msra.mxu0 %v2863_v3 }
 0x6f7   :  { %2197 = vmatprep.subr.mxu0 %v2480_v1 }
 0x6f8   :  { %2198 = vmatpush3.msra.mxu0 %v2867_v4 }
 0x6f9   :  { %2199 = vmatprep.subr.mxu0 %v2480_v1 }
 0x6fa   :  { %2200 = vmatpush3.msra.mxu0 %v2871_v5 }
 0x6fb   :  { %2201 = vmatprep.subr.mxu0 %v2480_v1 }
 0x6fc   :  { %2202 = vmatpush3.msra.mxu0 %v2875_v6 }
 0x6fd   :  { %2203 = vmatprep.subr.mxu0 %v2480_v1 }
 0x6fe   :  { %2204 = vmatpush3.msra.mxu0 %v2879_v7 }
 0x6ff   :  { %2205 = vmatprep.subr.mxu0 %v2480_v1 }
 0x700   :  { %2206 = vmatpush3.msra.mxu0 %v2883_v8 }
 0x701   :  { %2207 = vmatprep.subr.mxu0 %v2480_v1 }
 0x702   :  { %2208 = vmatpush3.msra.mxu0 %v2887_v9 }
 0x703   :  { %2209 = vmatprep.subr.mxu0 %v2480_v1 }
 0x704   :  { %2210 = vmatpush3.msra.mxu0 %v2891_v10 }
 0x705   :  { %2211 = vmatprep.subr.mxu0 %v2480_v1 }
 0x706   :  { %2212 = vmatpush3.msra.mxu0 %v2895_v11 }
 0x707   :  { %2213 = vmatprep.subr.mxu0 %v2480_v1 }
 0x708   :  { %2214 = vmatpush3.msra.mxu0 %v2899_v12 }
 0x709   :  { %2215 = vmatprep.subr.mxu0 %v2480_v1 }
 0x70a   :  { %2216 = vmatpush3.msra.mxu0 %v2903_v13 }
 0x70b   :  { %2217 = vmatprep.subr.mxu0 %v2480_v1 }
 0x70c   :  { %2218 = vmatpush3.msra.mxu0 %v2907_v14 }
 0x70d   :  { %2219 = vmatprep.subr.mxu0 %v2480_v1 }
 0x70e   :  { %2220 = vmatpush3.msra.mxu0 %v2911_v15 }
 0x70f   :  { %2221 = vmatprep.subr.mxu0 %v2480_v1 }
 0x710   :  { %2222 = vmatpush3.msra.mxu0 %v2915_v16 }
 0x711   :  { %2261 = vmatprep.subr.mxu0 %v2480_v1 }
 0x791   :  { %v3037_v39 = vpop.f32.mrf.mxu0 }
 0x793   :  { %v3039_v40 = vpop.f32.mrf.mxu0 }
 0x7b1   :  { %v990_v42 = vpop.f32.mrf.mxu0 }
 0x7b2   :  { %v994_v43 = vadd.f32 %v990_v42, %v792_v41 }
 0x7b3   :  { %v2155_v44 = vpop.f32.mrf.mxu0 }
 0x7b4   :  { %2393 = vtanh.f32 %v994_v43 }
 0x7c1   :  { %v2394_v45 = vpop.eup %2393 }
 0x7c2   :  { %2189 = vmatmul.mubr.f32.vlgmr.msra.gmra.mxu1 %v2394_v45 }
 0x7c3   :  { %2227 = vmatpush3.msra.mxu1 %v2856_v0  ;;  %2258 = vmatprep.mubr.msk.f32.mxu1 %vm2481_vm0, %v2480_v1 }
 0x7c4   :  { %2228 = vmatprep.subr.mxu1 %v2480_v1 }
 0x7c5   :  { %2229 = vmatpush3.msra.mxu1 %v2859_v2 }
 0x7c6   :  { %2230 = vmatprep.subr.mxu1 %v2480_v1 }
 0x7c7   :  { %2231 = vmatpush3.msra.mxu1 %v2863_v3 }
 0x7c8   :  { %2232 = vmatprep.subr.mxu1 %v2480_v1 }
 0x7c9   :  { %2233 = vmatpush3.msra.mxu1 %v2867_v4 }
 0x7ca   :  { %2234 = vmatprep.subr.mxu1 %v2480_v1 }
 0x7cb   :  { %2235 = vmatpush3.msra.mxu1 %v2871_v5 }
 0x7cc   :  { %2236 = vmatprep.subr.mxu1 %v2480_v1 }
 0x7cd   :  { %2237 = vmatpush3.msra.mxu1 %v2875_v6 }
 0x7ce   :  { %2238 = vmatprep.subr.mxu1 %v2480_v1 }
 0x7cf   :  { %2239 = vmatpush3.msra.mxu1 %v2879_v7 }
 0x7d0   :  { %2240 = vmatprep.subr.mxu1 %v2480_v1 }
 0x7d1   :  { %2241 = vmatpush3.msra.mxu1 %v2883_v8 }
 0x7d2   :  { %2242 = vmatprep.subr.mxu1 %v2480_v1 }
 0x7d3   :  { %2243 = vmatpush3.msra.mxu1 %v2887_v9 }
 0x7d4   :  { %2244 = vmatprep.subr.mxu1 %v2480_v1 }
 0x7d5   :  { %2245 = vmatpush3.msra.mxu1 %v2891_v10 }
 0x7d6   :  { %2246 = vmatprep.subr.mxu1 %v2480_v1 }
 0x7d7   :  { %2247 = vmatpush3.msra.mxu1 %v2895_v11 }
 0x7d8   :  { %2248 = vmatprep.subr.mxu1 %v2480_v1 }
 0x7d9   :  { %2249 = vmatpush3.msra.mxu1 %v2899_v12 }
 0x7da   :  { %2250 = vmatprep.subr.mxu1 %v2480_v1 }
 0x7db   :  { %2251 = vmatpush3.msra.mxu1 %v2903_v13 }
 0x7dc   :  { %2252 = vmatprep.subr.mxu1 %v2480_v1 }
 0x7dd   :  { %2253 = vmatpush3.msra.mxu1 %v2907_v14 }
 0x7de   :  { %2254 = vmatprep.subr.mxu1 %v2480_v1 }
 0x7df   :  { %2255 = vmatpush3.msra.mxu1 %v2911_v15 }
 0x7e0   :  { %2256 = vmatprep.subr.mxu1 %v2480_v1 }
 0x7e1   :  { %2257 = vmatpush3.msra.mxu1 %v2915_v16 }
 0x7e2   :  { %2296 = vmatprep.subr.mxu1 %v2480_v1 }
 0x882   :  { %v1063_v47 = vpop.f32.mrf.mxu1 }
 0x883   :  { %v1067_v48 = vadd.f32 %v1063_v47, %v797_v46 }
 0x884   :  { %v2190_v49 = vpop.f32.mrf.mxu1 }
 0x885   :  { %2395 = vtanh.f32 %v1067_v48 }
 0x892   :  { %v2396_v50 = vpop.eup %2395 }
 0x893   :  { %2224 = vmatmul.mubr.f32.vlgmr.msra.gmra.mxu0 %v2396_v50 }
 0x894   :  { %2262 = vmatpush3.msra.mxu0 %v2856_v0  ;;  %2293 = vmatprep.mubr.msk.f32.mxu0 %vm2481_vm0, %v2480_v1 }
 0x895   :  { %2263 = vmatprep.subr.mxu0 %v2480_v1 }
 0x896   :  { %2264 = vmatpush3.msra.mxu0 %v2859_v2 }
 0x897   :  { %2265 = vmatprep.subr.mxu0 %v2480_v1 }
 0x898   :  { %2266 = vmatpush3.msra.mxu0 %v2863_v3 }
 0x899   :  { %2267 = vmatprep.subr.mxu0 %v2480_v1 }
 0x89a   :  { %2268 = vmatpush3.msra.mxu0 %v2867_v4 }
 0x89b   :  { %2269 = vmatprep.subr.mxu0 %v2480_v1 }
 0x89c   :  { %2270 = vmatpush3.msra.mxu0 %v2871_v5 }
 0x89d   :  { %2271 = vmatprep.subr.mxu0 %v2480_v1 }
 0x89e   :  { %2272 = vmatpush3.msra.mxu0 %v2875_v6 }
 0x89f   :  { %2273 = vmatprep.subr.mxu0 %v2480_v1 }
 0x8a0   :  { %2274 = vmatpush3.msra.mxu0 %v2879_v7 }
 0x8a1   :  { %2275 = vmatprep.subr.mxu0 %v2480_v1 }
 0x8a2   :  { %2276 = vmatpush3.msra.mxu0 %v2883_v8 }
 0x8a3   :  { %2277 = vmatprep.subr.mxu0 %v2480_v1 }
 0x8a4   :  { %2278 = vmatpush3.msra.mxu0 %v2887_v9 }
 0x8a5   :  { %2279 = vmatprep.subr.mxu0 %v2480_v1 }
 0x8a6   :  { %2280 = vmatpush3.msra.mxu0 %v2891_v10 }
 0x8a7   :  { %2281 = vmatprep.subr.mxu0 %v2480_v1 }
 0x8a8   :  { %2282 = vmatpush3.msra.mxu0 %v2895_v11 }
 0x8a9   :  { %2283 = vmatprep.subr.mxu0 %v2480_v1 }
 0x8aa   :  { %2284 = vmatpush3.msra.mxu0 %v2899_v12 }
 0x8ab   :  { %2285 = vmatprep.subr.mxu0 %v2480_v1 }
 0x8ac   :  { %2286 = vmatpush3.msra.mxu0 %v2903_v13 }
 0x8ad   :  { %2287 = vmatprep.subr.mxu0 %v2480_v1 }
 0x8ae   :  { %2288 = vmatpush3.msra.mxu0 %v2907_v14 }
 0x8af   :  { %2289 = vmatprep.subr.mxu0 %v2480_v1 }
 0x8b0   :  { %2290 = vmatpush3.msra.mxu0 %v2911_v15 }
 0x8b1   :  { %2291 = vmatprep.subr.mxu0 %v2480_v1 }
 0x8b2   :  { %2292 = vmatpush3.msra.mxu0 %v2915_v16 }
 0x8b3   :  { %2331 = vmatprep.subr.mxu0 %v2480_v1 }
 0x953   :  { %v1136_v52 = vpop.f32.mrf.mxu0 }
 0x954   :  { %v1140_v53 = vadd.f32 %v1136_v52, %v802_v51 }
 0x955   :  { %v2225_v54 = vpop.f32.mrf.mxu0 }
 0x956   :  { %2397 = vtanh.f32 %v1140_v53 }
 0x963   :  { %v2398_v55 = vpop.eup %2397 }
 0x964   :  { %2259 = vmatmul.mubr.f32.vlgmr.msra.gmra.mxu1 %v2398_v55 }
 0x965   :  { %2297 = vmatpush3.msra.mxu1 %v2856_v0  ;;  %2328 = vmatprep.mubr.msk.f32.mxu1 %vm2481_vm0, %v2480_v1 }
 0x966   :  { %2298 = vmatprep.subr.mxu1 %v2480_v1 }
 0x967   :  { %2299 = vmatpush3.msra.mxu1 %v2859_v2 }
 0x968   :  { %2300 = vmatprep.subr.mxu1 %v2480_v1 }
 0x969   :  { %2301 = vmatpush3.msra.mxu1 %v2863_v3 }
 0x96a   :  { %2302 = vmatprep.subr.mxu1 %v2480_v1 }
 0x96b   :  { %2303 = vmatpush3.msra.mxu1 %v2867_v4 }
 0x96c   :  { %2304 = vmatprep.subr.mxu1 %v2480_v1 }
 0x96d   :  { %2305 = vmatpush3.msra.mxu1 %v2871_v5 }
 0x96e   :  { %2306 = vmatprep.subr.mxu1 %v2480_v1 }
 0x96f   :  { %2307 = vmatpush3.msra.mxu1 %v2875_v6 }
 0x970   :  { %2308 = vmatprep.subr.mxu1 %v2480_v1 }
 0x971   :  { %2309 = vmatpush3.msra.mxu1 %v2879_v7 }
 0x972   :  { %2310 = vmatprep.subr.mxu1 %v2480_v1 }
 0x973   :  { %2311 = vmatpush3.msra.mxu1 %v2883_v8 }
 0x974   :  { %2312 = vmatprep.subr.mxu1 %v2480_v1 }
 0x975   :  { %2313 = vmatpush3.msra.mxu1 %v2887_v9 }
 0x976   :  { %2314 = vmatprep.subr.mxu1 %v2480_v1 }
 0x977   :  { %2315 = vmatpush3.msra.mxu1 %v2891_v10 }
 0x978   :  { %2316 = vmatprep.subr.mxu1 %v2480_v1 }
 0x979   :  { %2317 = vmatpush3.msra.mxu1 %v2895_v11 }
 0x97a   :  { %2318 = vmatprep.subr.mxu1 %v2480_v1 }
 0x97b   :  { %2319 = vmatpush3.msra.mxu1 %v2899_v12 }
 0x97c   :  { %2320 = vmatprep.subr.mxu1 %v2480_v1 }
 0x97d   :  { %2321 = vmatpush3.msra.mxu1 %v2903_v13 }
 0x97e   :  { %2322 = vmatprep.subr.mxu1 %v2480_v1 }
 0x97f   :  { %2323 = vmatpush3.msra.mxu1 %v2907_v14 }
 0x980   :  { %2324 = vmatprep.subr.mxu1 %v2480_v1 }
 0x981   :  { %2325 = vmatpush3.msra.mxu1 %v2911_v15 }
 0x982   :  { %2326 = vmatprep.subr.mxu1 %v2480_v1 }
 0x983   :  { %2327 = vmatpush3.msra.mxu1 %v2915_v16 }
 0xa24   :  { %v1209_v57 = vpop.f32.mrf.mxu1 }
 0xa25   :  { %v1213_v58 = vadd.f32 %v1209_v57, %v807_v56 }
 0xa26   :  { %v2260_v59 = vpop.f32.mrf.mxu1 }
 0xa27   :  { %2399 = vtanh.f32 %v1213_v58 }
 0xa34   :  { %v2400_v60 = vpop.eup %2399 }
 0xa35   :  { %2294 = vmatmul.mubr.f32.vlgmr.msra.gmra.mxu0 %v2400_v60 }
 0xa36   :  { %2332 = vmatpush3.msra.mxu0 %v2856_v0  ;;  %2363 = vmatprep.mubr.msk.f32.mxu0 %vm2481_vm0, %v2480_v1 }
 0xa37   :  { %2333 = vmatprep.subr.mxu0 %v2480_v1 }
 0xa38   :  { %2334 = vmatpush3.msra.mxu0 %v2859_v2 }
 0xa39   :  { %2335 = vmatprep.subr.mxu0 %v2480_v1 }
 0xa3a   :  { %2336 = vmatpush3.msra.mxu0 %v2863_v3  ;;  %v817_v3 = vadd.f32 %v2994_v29, %v3039_v40 }
 0xa3b   :  { %2337 = vmatprep.subr.mxu0 %v2480_v1 }
 0xa3c   :  { %2338 = vmatpush3.msra.mxu0 %v2867_v4 }
 0xa3d   :  { %2339 = vmatprep.subr.mxu0 %v2480_v1 }
 0xa3e   :  { %2340 = vmatpush3.msra.mxu0 %v2871_v5 }
 0xa3f   :  { %2341 = vmatprep.subr.mxu0 %v2480_v1 }
 0xa40   :  { %2342 = vmatpush3.msra.mxu0 %v2875_v6 }
 0xa41   :  { %2343 = vmatprep.subr.mxu0 %v2480_v1 }
 0xa42   :  { %2344 = vmatpush3.msra.mxu0 %v2879_v7 }
 0xa43   :  { %2345 = vmatprep.subr.mxu0 %v2480_v1 }
 0xa44   :  { %2346 = vmatpush3.msra.mxu0 %v2883_v8  ;;  %v822_v8 = vadd.f32 %v3037_v39, %v2994_v29 }
 0xa45   :  { %2347 = vmatprep.subr.mxu0 %v2480_v1 }
 0xa46   :  { %2348 = vmatpush3.msra.mxu0 %v2887_v9 }
 0xa47   :  { %2349 = vmatprep.subr.mxu0 %v2480_v1 }
 0xa48   :  { %2350 = vmatpush3.msra.mxu0 %v2891_v10 }
 0xa49   :  { %2351 = vmatprep.subr.mxu0 %v2480_v1 }
 0xa4a   :  { %2352 = vmatpush3.msra.mxu0 %v2895_v11 }
 0xa4b   :  { %2353 = vmatprep.subr.mxu0 %v2480_v1 }
 0xa4c   :  { %2354 = vmatpush3.msra.mxu0 %v2899_v12  ;;  %v1464_v12 = vld [vmem:[%s3197_s4] ss:$0 sm:$0xff] }
 0xa4d   :  { %2355 = vmatprep.subr.mxu0 %v2480_v1 }
 0xa4e   :  { %2356 = vmatpush3.msra.mxu0 %v2903_v13 }
 0xa4f   :  { %2357 = vmatprep.subr.mxu0 %v2480_v1 }
 0xa50   :  { %2358 = vmatpush3.msra.mxu0 %v2907_v14 }
 0xa51   :  { %2359 = vmatprep.subr.mxu0 %v2480_v1 }
 0xa52   :  { %2360 = vmatpush3.msra.mxu0 %v2911_v15 }
 0xa53   :  { %2361 = vmatprep.subr.mxu0 %v2480_v1  ;;  %v1444_v1 = vld [vmem:[#allocation3] sm:$0x1] }
 0xa54   :  { %2362 = vmatpush3.msra.mxu0 %v2915_v16  ;;  %2366 = vpush %v1444_v1 }
 0xa85   :  { %s2367_s15 = spop %2366 }
 0xa86   :  { %v1446_v15 = vstv %s2367_s15 }
 0xaf5   :  { %v1282_v62 = vpop.f32.mrf.mxu0 }
 0xaf6   :  { %v1286_v63 = vadd.f32 %v1282_v62, %v812_v61 }
 0xaf7   :  { %v2295_v0 = vpop.f32.mrf.mxu0 }
 0xaf8   :  { %2401 = vtanh.f32 %v1286_v63 }
 0xb05   :  { %v2402_v2 = vpop.eup %2401 }
 0xb06   :  { %2329 = vmatmul.mubr.f32.vlgmr.msra.gmra.mxu1 %v2402_v2 }
 0xbc6   :  { %v1355_v4 = vpop.f32.mrf.mxu1 }
 0xbc7   :  { %v1359_v5 = vadd.f32 %v1355_v4, %v817_v3 }
 0xbc8   :  { %v2330_v6 = vpop.f32.mrf.mxu1 }
 0xbc9   :  { %2403 = vtanh.f32 %v1359_v5 }
 0xbd6   :  { %v2404_v7 = vpop.eup %2403 }
 0xbd7   :  { %2364 = vmatmul.mubr.f32.vlgmr.msra.gmra.mxu0 %v2404_v7 }
 0xc97   :  { %v1428_v9 = vpop.f32.mrf.mxu0 }
 0xc98   :  { %v1432_v10 = vadd.f32 %v1428_v9, %v822_v8 }
 0xc99   :  { %v2365_v11 = vpop.f32.mrf.mxu0 }
 0xc9a   :  { %2405 = vtanh.f32 %v1432_v10 }
 0xca7   :  { %v2406_v13 = vpop.eup %2405 }
 0xca8   :  { %v1441_v14 = vmul.f32 %v2406_v13, %v1464_v12 }
 0xcaa   :  { %1442 = vadd.xlane.f32.xlu0 %v1441_v14 }
 0xd33   :  { %v1443_v16 = vpop.xlane.xlu0 %1442 }
 0xd34   :  { %v1447_v17 = vadd.f32 %v1446_v15, %v1443_v16 }
 0xd36   :  { %v1465_v18 = vmul.f32 -1.442695, %v1447_v17 }
 0xd38   :  { %2407 = vpow2.f32 %v1465_v18 }
 0xd45   :  { %v2408_v19 = vpop.eup %2407 }
 0xd46   :  { %v1451_v20 = vadd.f32 1.0, %v2408_v19 }
 0xd48   :  { %2409 = vrcp.f32 %v1451_v20 }
 0xd55   :  { %v2410_v21 = vpop.eup %2409 }
 0xd56   :  { %1455 = vst.msk [vmem:[%s3199_s6] sm:$0xff] %vm1454_vm1, %v2410_v21 }
 0xd57   :  { %1460 = vsyncpa [#allocation5], 1 }
 0xd58   :  { %1461 = vsyncpa [#allocation7], 1 }

</bundles_post_ra>
